<compile_context>
chip_gen: v7x
topology: tpu7x:2x2x1
jax: 0.10.0
libtpu: 0.0.40
codegen_flags: <defaults>
</compile_context>

<pallas_src>
import functools
import math

import jax
import jax.numpy as jnp
from jax import lax
from jax.experimental import pallas as pl
from jax.experimental.pallas import tpu as pltpu

LN_EPS = 1e-6  # AddAndNorm constructs nn.LayerNorm(size, eps=1e-06)


def _round_up(v, m):
    return (v + m - 1) // m * m


def _layernorm_padded(x, gamma, beta, true_dim):
    # x is zero beyond `true_dim` lanes and gamma/beta are zero-padded, so lane
    # sums ignore the pad and the output pad region stays exactly zero.
    inv_n = 1.0 / float(true_dim)
    mu = jnp.sum(x, axis=-1, keepdims=True) * inv_n
    ex2 = jnp.sum(x * x, axis=-1, keepdims=True) * inv_n
    var = ex2 - mu * mu
    return (x - mu) * lax.rsqrt(var + LN_EPS) * gamma + beta


def encoder_layer_kernel(
    x_ref,       # (1, nw, d_pad)   f32  full sequence for this batch element
    wq_t_ref,    # (d_pad, d_pad)   bf16 == pad(Wq.T)
    wk_t_ref,    # (d_pad, d_pad)   bf16
    wv_t_ref,    # (d_pad, d_pad)   bf16
    wo_t_ref,    # (d_pad, d_pad)   bf16
    ln1_g_ref,   # (1, d_pad)       f32
    ln1_b_ref,   # (1, d_pad)       f32
    w1_t_ref,    # (d_pad, f_pad)   bf16
    b1_ref,      # (1, f_pad)       f32
    w2_t_ref,    # (f_pad, d_pad)   bf16
    b2_ref,      # (1, d_pad)       f32
    ln2_g_ref,   # (1, d_pad)       f32
    ln2_b_ref,   # (1, d_pad)       f32
    o_ref,       # (1, tq, d_pad)   f32
    k_sc,        # (nw, d_pad)      bf16 scratch: K for the whole sequence
    v_sc,        # (nw, d_pad)      bf16 scratch: V for the whole sequence
    *,
    h: int,
    d_k: int,
    d_model: int,
    inv_scaling: float,
    tq: int,
    ff_chunk: int,
    n_ff_chunks: int,
):
    s = pl.program_id(1)
    d_pad = o_ref.shape[-1]

    # --- K / V projections, once per batch element (seq axis is "arbitrary") --
    @pl.when(s == 0)
    def _():
        x_full = x_ref[0].astype(jnp.bfloat16)                       # (nw, d_pad)
        k_sc[...] = jnp.dot(x_full, wk_t_ref[...],
                            preferred_element_type=jnp.float32).astype(jnp.bfloat16)
        v_sc[...] = jnp.dot(x_full, wv_t_ref[...],
                            preferred_element_type=jnp.float32).astype(jnp.bfloat16)

    # --- current query tile ---------------------------------------------------
    row0 = pl.multiple_of(s * tq, tq)
    x_tile_f32 = x_ref[0, pl.ds(row0, tq), :].astype(jnp.float32)    # (tq, d_pad)
    x_tile = x_tile_f32.astype(jnp.bfloat16)

    # --- Multi-Head Attention ---------------------------------------------
    # 1/sqrt(d_k) folded into Q as a multiply (no division in the softmax path).
    q = jnp.dot(x_tile, wq_t_ref[...],
                preferred_element_type=jnp.float32) * inv_scaling    # (tq, d_pad)
    k_all = k_sc[...]                                                # (nw, d_pad)
    v_all = v_sc[...]
    wo_full = wo_t_ref[...]                                          # (d_pad, d_pad)

    # Head outputs folded directly into the Wo projection (no lane concat).
    mha = jnp.zeros((tq, d_pad), jnp.float32)
    for hh in range(h):                                              # static unroll
        sl = slice(hh * d_k, (hh + 1) * d_k)
        qh = q[:, sl].astype(jnp.bfloat16)                           # (tq, d_k)
        kh = k_all[:, sl]                                            # (nw, d_k)
        vh = v_all[:, sl]                                            # (nw, d_k)
        # scores = qh @ kh.T without materializing the transpose.
        scores = lax.dot_general(qh, kh, (((1,), (1,)), ((), ())),
                                 preferred_element_type=jnp.float32)  # (tq, nw)
        scores = scores - jnp.max(scores, axis=-1, keepdims=True)
        e = jnp.exp(scores)
        probs = e * pl.reciprocal(jnp.sum(e, axis=-1, keepdims=True), approx=True)
        head = jnp.dot(probs.astype(jnp.bfloat16), vh,
                       preferred_element_type=jnp.float32)            # (tq, d_k)
        mha = mha + jnp.dot(head.astype(jnp.bfloat16), wo_full[sl, :],
                            preferred_element_type=jnp.float32)       # (tq, d_pad)

    # --- Add & Norm #1 ------------------------------------------------------
    y1 = _layernorm_padded(x_tile_f32 + mha, ln1_g_ref[...], ln1_b_ref[...], d_model)

    # --- Position-wise FFN, chunked over d_ff -------------------------------
    y1_bf = y1.astype(jnp.bfloat16)
    b1_row = b1_ref[...]                                             # (1, f_pad)
    ffn = jnp.zeros((tq, d_pad), jnp.float32)
    for c in range(n_ff_chunks):                                     # static unroll
        c0 = c * ff_chunk
        hid = jnp.dot(y1_bf, w1_t_ref[:, c0:c0 + ff_chunk],
                      preferred_element_type=jnp.float32)            # (tq, ff_chunk)
        hid = jnp.maximum(hid + b1_row[:, c0:c0 + ff_chunk], 0.0)
        ffn = ffn + jnp.dot(hid.astype(jnp.bfloat16),
                            w2_t_ref[c0:c0 + ff_chunk, :],
                            preferred_element_type=jnp.float32)      # (tq, d_pad)
    ffn = ffn + b2_ref[...]

    # --- Add & Norm #2 ------------------------------------------------------
    y2 = _layernorm_padded(y1 + ffn, ln2_g_ref[...], ln2_b_ref[...], d_model)
    o_ref[0] = y2.astype(o_ref.dtype)


def prepare_params(params):
    """One-time preprocessing: transpose (PyTorch Linear is y = x @ W.T),
    zero-pad to lane-dense widths, cast matmul weights to bf16."""
    d_model = params["wq"].shape[0]
    d_ff = params["w1"].shape[0]
    d_pad = _round_up(d_model, 128)
    f_pad = _round_up(d_ff, 128)

    def pad_mat(m, rows, cols, dtype):
        out = jnp.zeros((rows, cols), dtype)
        return out.at[:m.shape[0], :m.shape[1]].set(m.astype(dtype))

    def pad_vec(v, cols, dtype):
        out = jnp.zeros((1, cols), dtype)
        return out.at[0, :v.shape[0]].set(v.astype(dtype))

    return {
        "wq_t": pad_mat(params["wq"].T, d_pad, d_pad, jnp.bfloat16),
        "wk_t": pad_mat(params["wk"].T, d_pad, d_pad, jnp.bfloat16),
        "wv_t": pad_mat(params["wv"].T, d_pad, d_pad, jnp.bfloat16),
        "wo_t": pad_mat(params["wo"].T, d_pad, d_pad, jnp.bfloat16),
        "w1_t": pad_mat(params["w1"].T, d_pad, f_pad, jnp.bfloat16),
        "w2_t": pad_mat(params["w2"].T, f_pad, d_pad, jnp.bfloat16),
        "b1": pad_vec(params["b1"], f_pad, jnp.float32),
        "b2": pad_vec(params["b2"], d_pad, jnp.float32),
        "ln1_g": pad_vec(params["ln1_g"], d_pad, jnp.float32),
        "ln1_b": pad_vec(params["ln1_b"], d_pad, jnp.float32),
        "ln2_g": pad_vec(params["ln2_g"], d_pad, jnp.float32),
        "ln2_b": pad_vec(params["ln2_b"], d_pad, jnp.float32),
    }


def encoder_layer(x, prepped, *, h: int, d_model: int):
    """x: (nb, nw, d_model) f32; prepped: output of prepare_params."""
    nb, nw, _ = x.shape
    d_pad = prepped["wq_t"].shape[0]
    f_pad = prepped["w1_t"].shape[1]
    d_k = d_model // h
    inv_scaling = 1.0 / math.sqrt(d_k)

    # Query-tile size along the sequence.
    if nw % 256 == 0:
        tq = 256
    elif nw % 128 == 0:
        tq = 128
    else:
        tq = nw
    n_q_tiles = nw // tq

    # d_ff chunking for the FFN.
    if f_pad > 512 and f_pad % 512 == 0:
        ff_chunk = 512
    else:
        ff_chunk = f_pad
    n_ff_chunks = f_pad // ff_chunk

    # Pad feature axis to a lane-dense width.
    x_in = jnp.pad(x, ((0, 0), (0, 0), (0, d_pad - d_model))) if d_pad != d_model else x

    kernel = functools.partial(
        encoder_layer_kernel, h=h, d_k=d_k, d_model=d_model,
        inv_scaling=inv_scaling, tq=tq, ff_chunk=ff_chunk,
        n_ff_chunks=n_ff_chunks)

    def const(shape):
        return pl.BlockSpec(shape, lambda b, s: (0,) * len(shape))

    out = pl.pallas_call(
        kernel,
        out_shape=jax.ShapeDtypeStruct((nb, nw, d_pad), x.dtype),
        grid=(nb, n_q_tiles),
        in_specs=[
            pl.BlockSpec((1, nw, d_pad), lambda b, s: (b, 0, 0)),   # x (full seq)
            const((d_pad, d_pad)),    # wq_t
            const((d_pad, d_pad)),    # wk_t
            const((d_pad, d_pad)),    # wv_t
            const((d_pad, d_pad)),    # wo_t
            const((1, d_pad)),        # ln1_g
            const((1, d_pad)),        # ln1_b
            const((d_pad, f_pad)),    # w1_t
            const((1, f_pad)),        # b1
            const((f_pad, d_pad)),    # w2_t
            const((1, d_pad)),        # b2
            const((1, d_pad)),        # ln2_g
            const((1, d_pad)),        # ln2_b
        ],
        out_specs=pl.BlockSpec((1, tq, d_pad), lambda b, s: (b, s, 0)),
        scratch_shapes=[
            pltpu.VMEM((nw, d_pad), jnp.bfloat16),   # K, whole sequence
            pltpu.VMEM((nw, d_pad), jnp.bfloat16),   # V, whole sequence
        ],
        compiler_params=pltpu.CompilerParams(
            dimension_semantics=("parallel", "arbitrary"),
            vmem_limit_bytes=48 * 1024 * 1024,
        ),
    )(x_in, prepped["wq_t"], prepped["wk_t"], prepped["wv_t"], prepped["wo_t"],
      prepped["ln1_g"], prepped["ln1_b"], prepped["w1_t"], prepped["b1"],
      prepped["w2_t"], prepped["b2"], prepped["ln2_g"], prepped["ln2_b"])

    return out[:, :, :d_model] if d_pad != d_model else out


# ----------------------- pure-JAX f32 reference (for checking) -----------------
def encoder_layer_ref(x, params, *, h: int):
    nb, nw, d_model = x.shape
    d_k = d_model // h
    scaling = jnp.sqrt(jnp.float32(d_k))

    def ln(v, g, b, eps=LN_EPS):
        mu = jnp.mean(v, axis=-1, keepdims=True)
        var = jnp.mean((v - mu) ** 2, axis=-1, keepdims=True)
        return (v - mu) / jnp.sqrt(var + eps) * g + b

    q = x @ params["wq"].T
    k = x @ params["wk"].T
    v = x @ params["wv"].T
    q = q.reshape(nb, nw, h, d_k).transpose(0, 2, 1, 3)
    k = k.reshape(nb, nw, h, d_k).transpose(0, 2, 1, 3)
    v = v.reshape(nb, nw, h, d_k).transpose(0, 2, 1, 3)
    scores = jnp.einsum("bhqd,bhkd->bhqk", q, k) / scaling
    probs = jax.nn.softmax(scores, axis=-1)
    attn = jnp.einsum("bhqk,bhkd->bhqd", probs, v)
    attn = attn.transpose(0, 2, 1, 3).reshape(nb, nw, d_model)
    mha = attn @ params["wo"].T
    y1 = ln(x + mha, params["ln1_g"], params["ln1_b"])
    hid = jnp.maximum(y1 @ params["w1"].T + params["b1"], 0.0)
    ffn = hid @ params["w2"].T + params["b2"]
    return ln(y1 + ffn, params["ln2_g"], params["ln2_b"])


if __name__ == "__main__":
    # Small, deterministic config: nb=2, nw=8, d_model=32, h=4, d_ff=64
    nb, nw, d_model, h, d_ff = 2, 8, 32, 4, 64

    key = jax.random.PRNGKey(0)
    keys = jax.random.split(key, 9)
    scale = 0.1
    params = {
        "wq": scale * jax.random.normal(keys[0], (d_model, d_model), jnp.float32),
        "wk": scale * jax.random.normal(keys[1], (d_model, d_model), jnp.float32),
        "wv": scale * jax.random.normal(keys[2], (d_model, d_model), jnp.float32),
        "wo": scale * jax.random.normal(keys[3], (d_model, d_model), jnp.float32),
        "w1": scale * jax.random.normal(keys[4], (d_ff, d_model), jnp.float32),
        "b1": scale * jax.random.normal(keys[5], (d_ff,), jnp.float32),
        "w2": scale * jax.random.normal(keys[6], (d_model, d_ff), jnp.float32),
        "b2": scale * jax.random.normal(keys[7], (d_model,), jnp.float32),
        # nn.LayerNorm default init: weight=1, bias=0
        "ln1_g": jnp.ones((d_model,), jnp.float32),
        "ln1_b": jnp.zeros((d_model,), jnp.float32),
        "ln2_g": jnp.ones((d_model,), jnp.float32),
        "ln2_b": jnp.zeros((d_model,), jnp.float32),
    }
    x = jax.random.normal(keys[8], (nb, nw, d_model), jnp.float32)

    # One-time weight prep (transpose + pad + bf16 cast) outside the call path.
    prepped = jax.tree_util.tree_map(jax.block_until_ready, prepare_params(params))

    run = jax.jit(functools.partial(encoder_layer, h=h, d_model=d_model))
    out = jax.block_until_ready(run(x, prepped))

    ref = jax.block_until_ready(encoder_layer_ref(x, params, h=h))
    assert out.shape == (nb, nw, d_model)
    # Tolerance accounts for bf16 matmul inputs (f32 accumulation) and the
    # EUP approximate reciprocal in the softmax.
    max_err = float(jnp.max(jnp.abs(out - ref)))
    assert max_err < 5e-2, f"Pallas kernel mismatch vs reference: {max_err}"

    print("KERNEL_OK")
</pallas_src>

<mosaic_0001>
module attributes {stable_mosaic.version = 11 : i64} {
  func.func @encoder_layer_kernel(%arg0: i32, %arg1: i32, %arg2: memref<1x8x128xf32, #tpu.memory_space<vmem>>, %arg3: memref<128x128xbf16, #tpu.memory_space<vmem>>, %arg4: memref<128x128xbf16, #tpu.memory_space<vmem>>, %arg5: memref<128x128xbf16, #tpu.memory_space<vmem>>, %arg6: memref<128x128xbf16, #tpu.memory_space<vmem>>, %arg7: memref<1x128xf32, #tpu.memory_space<vmem>>, %arg8: memref<1x128xf32, #tpu.memory_space<vmem>>, %arg9: memref<128x128xbf16, #tpu.memory_space<vmem>>, %arg10: memref<1x128xf32, #tpu.memory_space<vmem>>, %arg11: memref<128x128xbf16, #tpu.memory_space<vmem>>, %arg12: memref<1x128xf32, #tpu.memory_space<vmem>>, %arg13: memref<1x128xf32, #tpu.memory_space<vmem>>, %arg14: memref<1x128xf32, #tpu.memory_space<vmem>>, %arg15: memref<1x8x128xf32, #tpu.memory_space<vmem>>, %arg16: memref<8x128xbf16, #tpu.memory_space<vmem>>, %arg17: memref<8x128xbf16, #tpu.memory_space<vmem>>) attributes {dimension_semantics = [#tpu.dimension_semantics<parallel>, #tpu.dimension_semantics<arbitrary>], iteration_bounds = array<i64: 2, 1>, scalar_prefetch = 0 : i64, scratch_operands = 2 : i64, tpu.core_type = #tpu.core_type<tc>, window_params = [{transform_indices = @transform_0, window_bounds = array<i64: 1, 8, 128>}, {pipeline_mode = #tpu.pipeline_mode<synchronous>, transform_indices = @transform_1, window_bounds = array<i64: 128, 128>}, {pipeline_mode = #tpu.pipeline_mode<synchronous>, transform_indices = @transform_2, window_bounds = array<i64: 128, 128>}, {pipeline_mode = #tpu.pipeline_mode<synchronous>, transform_indices = @transform_3, window_bounds = array<i64: 128, 128>}, {pipeline_mode = #tpu.pipeline_mode<synchronous>, transform_indices = @transform_4, window_bounds = array<i64: 128, 128>}, {pipeline_mode = #tpu.pipeline_mode<synchronous>, transform_indices = @transform_5, window_bounds = array<i64: 1, 128>}, {pipeline_mode = #tpu.pipeline_mode<synchronous>, transform_indices = @transform_6, window_bounds = array<i64: 1, 128>}, {pipeline_mode = #tpu.pipeline_mode<synchronous>, transform_indices = @transform_7, window_bounds = array<i64: 128, 128>}, {pipeline_mode = #tpu.pipeline_mode<synchronous>, transform_indices = @transform_8, window_bounds = array<i64: 1, 128>}, {pipeline_mode = #tpu.pipeline_mode<synchronous>, transform_indices = @transform_9, window_bounds = array<i64: 128, 128>}, {pipeline_mode = #tpu.pipeline_mode<synchronous>, transform_indices = @transform_10, window_bounds = array<i64: 1, 128>}, {pipeline_mode = #tpu.pipeline_mode<synchronous>, transform_indices = @transform_11, window_bounds = array<i64: 1, 128>}, {pipeline_mode = #tpu.pipeline_mode<synchronous>, transform_indices = @transform_12, window_bounds = array<i64: 1, 128>}, {transform_indices = @transform_13, window_bounds = array<i64: 1, 8, 128>}]} {
    %c0_i32 = arith.constant 0 : i32
    %0 = arith.cmpi eq, %arg1, %c0_i32 : i32
    %1 = arith.extui %0 : i1 to i32
    %c0_i32_0 = arith.constant 0 : i32
    %2 = arith.cmpi ne, %1, %c0_i32_0 : i32
    scf.if %2 {
      %c0_65 = arith.constant 0 : index
      %c0_66 = arith.constant 0 : index
      %c0_67 = arith.constant 0 : index
      %170 = vector.load %arg2[%c0_65, %c0_66, %c0_67] : memref<1x8x128xf32, #tpu.memory_space<vmem>>, vector<1x8x128xf32>
      %171 = vector.shape_cast %170 : vector<1x8x128xf32> to vector<8x128xf32>
      %172 = arith.truncf %171 : vector<8x128xf32> to vector<8x128xbf16>
      %c0_68 = arith.constant 0 : index
      %c0_69 = arith.constant 0 : index
      %173 = vector.load %arg4[%c0_68, %c0_69] : memref<128x128xbf16, #tpu.memory_space<vmem>>, vector<128x128xbf16>
      %cst_70 = arith.constant dense<0.000000e+00> : vector<8x128xf32>
      %174 = tpu.matmul %172, %173, %cst_70 {dimension_numbers = #tpu.dot_dimension_numbers<[1], [0], [0], [1], [0, 0, 1, 1], [], []>} : vector<8x128xbf16>, vector<128x128xbf16>, vector<8x128xf32> -> vector<8x128xf32>
      %175 = arith.truncf %174 : vector<8x128xf32> to vector<8x128xbf16>
      %c0_71 = arith.constant 0 : index
      %c0_72 = arith.constant 0 : index
      %176 = vector.load %arg16[%c0_71, %c0_72] : memref<8x128xbf16, #tpu.memory_space<vmem>>, vector<8x128xbf16>
      tpu.vector_store %arg16[%c0_71, %c0_72], %175 {strides = array<i32>} : memref<8x128xbf16, #tpu.memory_space<vmem>>, vector<8x128xbf16>,
      %c0_73 = arith.constant 0 : index
      %c0_74 = arith.constant 0 : index
      %177 = vector.load %arg5[%c0_73, %c0_74] : memref<128x128xbf16, #tpu.memory_space<vmem>>, vector<128x128xbf16>
      %cst_75 = arith.constant dense<0.000000e+00> : vector<8x128xf32>
      %178 = tpu.matmul %172, %177, %cst_75 {dimension_numbers = #tpu.dot_dimension_numbers<[1], [0], [0], [1], [0, 0, 1, 1], [], []>} : vector<8x128xbf16>, vector<128x128xbf16>, vector<8x128xf32> -> vector<8x128xf32>
      %179 = arith.truncf %178 : vector<8x128xf32> to vector<8x128xbf16>
      %c0_76 = arith.constant 0 : index
      %c0_77 = arith.constant 0 : index
      %180 = vector.load %arg17[%c0_76, %c0_77] : memref<8x128xbf16, #tpu.memory_space<vmem>>, vector<8x128xbf16>
      tpu.vector_store %arg17[%c0_76, %c0_77], %179 {strides = array<i32>} : memref<8x128xbf16, #tpu.memory_space<vmem>>, vector<8x128xbf16>,
    } else {
    }
    %c8_i32 = arith.constant 8 : i32
    %3 = arith.muli %arg1, %c8_i32 : i32
    %4 = tpu.assume_multiple %3, 8 : i32
    %c0 = arith.constant 0 : index
    %5 = arith.index_cast %4 : i32 to index
    %c0_1 = arith.constant 0 : index
    %6 = vector.load %arg2[%c0, %5, %c0_1] : memref<1x8x128xf32, #tpu.memory_space<vmem>>, vector<1x8x128xf32>
    %7 = vector.shape_cast %6 : vector<1x8x128xf32> to vector<8x128xf32>
    %8 = arith.truncf %7 : vector<8x128xf32> to vector<8x128xbf16>
    %c0_2 = arith.constant 0 : index
    %c0_3 = arith.constant 0 : index
    %9 = vector.load %arg3[%c0_2, %c0_3] : memref<128x128xbf16, #tpu.memory_space<vmem>>, vector<128x128xbf16>
    %cst = arith.constant dense<0.000000e+00> : vector<8x128xf32>
    %10 = tpu.matmul %8, %9, %cst {dimension_numbers = #tpu.dot_dimension_numbers<[1], [0], [0], [1], [0, 0, 1, 1], [], []>} : vector<8x128xbf16>, vector<128x128xbf16>, vector<8x128xf32> -> vector<8x128xf32>
    %cst_4 = arith.constant 0.353553385 : f32
    %11 = vector.broadcast %cst_4 : f32 to vector<8x128xf32>
    %12 = arith.mulf %10, %11 : vector<8x128xf32>
    %c0_5 = arith.constant 0 : index
    %c0_6 = arith.constant 0 : index
    %13 = vector.load %arg16[%c0_5, %c0_6] : memref<8x128xbf16, #tpu.memory_space<vmem>>, vector<8x128xbf16>
    %c0_7 = arith.constant 0 : index
    %c0_8 = arith.constant 0 : index
    %14 = vector.load %arg17[%c0_7, %c0_8] : memref<8x128xbf16, #tpu.memory_space<vmem>>, vector<8x128xbf16>
    %c0_9 = arith.constant 0 : index
    %c0_10 = arith.constant 0 : index
    %15 = vector.load %arg6[%c0_9, %c0_10] : memref<128x128xbf16, #tpu.memory_space<vmem>>, vector<128x128xbf16>
    %cst_11 = arith.constant 0.000000e+00 : f32
    %16 = vector.broadcast %cst_11 : f32 to vector<8x128xf32>
    %17 = vector.extract_strided_slice %12 {offsets = [0, 0], sizes = [8, 8], strides = [1, 1]} : vector<8x128xf32> to vector<8x8xf32>
    %18 = arith.truncf %17 : vector<8x8xf32> to vector<8x8xbf16>
    %19 = vector.extract_strided_slice %13 {offsets = [0, 0], sizes = [8, 8], strides = [1, 1]} : vector<8x128xbf16> to vector<8x8xbf16>
    %20 = vector.extract_strided_slice %14 {offsets = [0, 0], sizes = [8, 8], strides = [1, 1]} : vector<8x128xbf16> to vector<8x8xbf16>
    %cst_12 = arith.constant dense<0.000000e+00> : vector<8x8xf32>
    %21 = tpu.matmul %18, %19, %cst_12 {dimension_numbers = #tpu.dot_dimension_numbers<[1], [1], [0], [0], [0, 0, 1, 0], [], []>} : vector<8x8xbf16>, vector<8x8xbf16>, vector<8x8xf32> -> vector<8x8xf32>
    %cst_13 = arith.constant dense<0xFF800000> : vector<8xf32>
    %22 = vector.multi_reduction <maximumf>, %21, %cst_13 [1] : vector<8x8xf32> to vector<8xf32>
    %23 = vector.shape_cast %22 : vector<8xf32> to vector<8x1xf32>
    %24 = vector.broadcast %23 : vector<8x1xf32> to vector<8x8xf32>
    %25 = arith.subf %21, %24 : vector<8x8xf32>
    %26 = math.exp %25 : vector<8x8xf32>
    %cst_14 = arith.constant dense<0.000000e+00> : vector<8xf32>
    %27 = vector.multi_reduction <add>, %26, %cst_14 [1] : vector<8x8xf32> to vector<8xf32>
    %28 = vector.shape_cast %27 : vector<8xf32> to vector<8x1xf32>
    %29 = tpu.reciprocal %28 {approx = true} : vector<8x1xf32> -> vector<8x1xf32>
    %30 = vector.broadcast %29 : vector<8x1xf32> to vector<8x8xf32>
    %31 = arith.mulf %26, %30 : vector<8x8xf32>
    %32 = arith.truncf %31 : vector<8x8xf32> to vector<8x8xbf16>
    %cst_15 = arith.constant dense<0.000000e+00> : vector<8x8xf32>
    %33 = tpu.matmul %32, %20, %cst_15 {dimension_numbers = #tpu.dot_dimension_numbers<[1], [0], [0], [1], [0, 0, 1, 1], [], []>} : vector<8x8xbf16>, vector<8x8xbf16>, vector<8x8xf32> -> vector<8x8xf32>
    %34 = arith.truncf %33 : vector<8x8xf32> to vector<8x8xbf16>
    %35 = vector.extract_strided_slice %15 {offsets = [0, 0], sizes = [8, 128], strides = [1, 1]} : vector<128x128xbf16> to vector<8x128xbf16>
    %cst_16 = arith.constant dense<0.000000e+00> : vector<8x128xf32>
    %36 = tpu.matmul %34, %35, %cst_16 {dimension_numbers = #tpu.dot_dimension_numbers<[1], [0], [0], [1], [0, 0, 1, 1], [], []>} : vector<8x8xbf16>, vector<8x128xbf16>, vector<8x128xf32> -> vector<8x128xf32>
    %37 = arith.addf %16, %36 : vector<8x128xf32>
    %38 = vector.extract_strided_slice %12 {offsets = [0, 8], sizes = [8, 8], strides = [1, 1]} : vector<8x128xf32> to vector<8x8xf32>
    %39 = arith.truncf %38 : vector<8x8xf32> to vector<8x8xbf16>
    %40 = vector.extract_strided_slice %13 {offsets = [0, 8], sizes = [8, 8], strides = [1, 1]} : vector<8x128xbf16> to vector<8x8xbf16>
    %41 = vector.extract_strided_slice %14 {offsets = [0, 8], sizes = [8, 8], strides = [1, 1]} : vector<8x128xbf16> to vector<8x8xbf16>
    %cst_17 = arith.constant dense<0.000000e+00> : vector<8x8xf32>
    %42 = tpu.matmul %39, %40, %cst_17 {dimension_numbers = #tpu.dot_dimension_numbers<[1], [1], [0], [0], [0, 0, 1, 0], [], []>} : vector<8x8xbf16>, vector<8x8xbf16>, vector<8x8xf32> -> vector<8x8xf32>
    %cst_18 = arith.constant dense<0xFF800000> : vector<8xf32>
    %43 = vector.multi_reduction <maximumf>, %42, %cst_18 [1] : vector<8x8xf32> to vector<8xf32>
    %44 = vector.shape_cast %43 : vector<8xf32> to vector<8x1xf32>
    %45 = vector.broadcast %44 : vector<8x1xf32> to vector<8x8xf32>
    %46 = arith.subf %42, %45 : vector<8x8xf32>
    %47 = math.exp %46 : vector<8x8xf32>
    %cst_19 = arith.constant dense<0.000000e+00> : vector<8xf32>
    %48 = vector.multi_reduction <add>, %47, %cst_19 [1] : vector<8x8xf32> to vector<8xf32>
    %49 = vector.shape_cast %48 : vector<8xf32> to vector<8x1xf32>
    %50 = tpu.reciprocal %49 {approx = true} : vector<8x1xf32> -> vector<8x1xf32>
    %51 = vector.broadcast %50 : vector<8x1xf32> to vector<8x8xf32>
    %52 = arith.mulf %47, %51 : vector<8x8xf32>
    %53 = arith.truncf %52 : vector<8x8xf32> to vector<8x8xbf16>
    %cst_20 = arith.constant dense<0.000000e+00> : vector<8x8xf32>
    %54 = tpu.matmul %53, %41, %cst_20 {dimension_numbers = #tpu.dot_dimension_numbers<[1], [0], [0], [1], [0, 0, 1, 1], [], []>} : vector<8x8xbf16>, vector<8x8xbf16>, vector<8x8xf32> -> vector<8x8xf32>
    %55 = arith.truncf %54 : vector<8x8xf32> to vector<8x8xbf16>
    %56 = vector.extract_strided_slice %15 {offsets = [8, 0], sizes = [8, 128], strides = [1, 1]} : vector<128x128xbf16> to vector<8x128xbf16>
    %cst_21 = arith.constant dense<0.000000e+00> : vector<8x128xf32>
    %57 = tpu.matmul %55, %56, %cst_21 {dimension_numbers = #tpu.dot_dimension_numbers<[1], [0], [0], [1], [0, 0, 1, 1], [], []>} : vector<8x8xbf16>, vector<8x128xbf16>, vector<8x128xf32> -> vector<8x128xf32>
    %58 = arith.addf %37, %57 : vector<8x128xf32>
    %59 = vector.extract_strided_slice %12 {offsets = [0, 16], sizes = [8, 8], strides = [1, 1]} : vector<8x128xf32> to vector<8x8xf32>
    %60 = arith.truncf %59 : vector<8x8xf32> to vector<8x8xbf16>
    %61 = vector.extract_strided_slice %13 {offsets = [0, 16], sizes = [8, 8], strides = [1, 1]} : vector<8x128xbf16> to vector<8x8xbf16>
    %62 = vector.extract_strided_slice %14 {offsets = [0, 16], sizes = [8, 8], strides = [1, 1]} : vector<8x128xbf16> to vector<8x8xbf16>
    %cst_22 = arith.constant dense<0.000000e+00> : vector<8x8xf32>
    %63 = tpu.matmul %60, %61, %cst_22 {dimension_numbers = #tpu.dot_dimension_numbers<[1], [1], [0], [0], [0, 0, 1, 0], [], []>} : vector<8x8xbf16>, vector<8x8xbf16>, vector<8x8xf32> -> vector<8x8xf32>
    %cst_23 = arith.constant dense<0xFF800000> : vector<8xf32>
    %64 = vector.multi_reduction <maximumf>, %63, %cst_23 [1] : vector<8x8xf32> to vector<8xf32>
    %65 = vector.shape_cast %64 : vector<8xf32> to vector<8x1xf32>
    %66 = vector.broadcast %65 : vector<8x1xf32> to vector<8x8xf32>
    %67 = arith.subf %63, %66 : vector<8x8xf32>
    %68 = math.exp %67 : vector<8x8xf32>
    %cst_24 = arith.constant dense<0.000000e+00> : vector<8xf32>
    %69 = vector.multi_reduction <add>, %68, %cst_24 [1] : vector<8x8xf32> to vector<8xf32>
    %70 = vector.shape_cast %69 : vector<8xf32> to vector<8x1xf32>
    %71 = tpu.reciprocal %70 {approx = true} : vector<8x1xf32> -> vector<8x1xf32>
    %72 = vector.broadcast %71 : vector<8x1xf32> to vector<8x8xf32>
    %73 = arith.mulf %68, %72 : vector<8x8xf32>
    %74 = arith.truncf %73 : vector<8x8xf32> to vector<8x8xbf16>
    %cst_25 = arith.constant dense<0.000000e+00> : vector<8x8xf32>
    %75 = tpu.matmul %74, %62, %cst_25 {dimension_numbers = #tpu.dot_dimension_numbers<[1], [0], [0], [1], [0, 0, 1, 1], [], []>} : vector<8x8xbf16>, vector<8x8xbf16>, vector<8x8xf32> -> vector<8x8xf32>
    %76 = arith.truncf %75 : vector<8x8xf32> to vector<8x8xbf16>
    %77 = vector.extract_strided_slice %15 {offsets = [16, 0], sizes = [8, 128], strides = [1, 1]} : vector<128x128xbf16> to vector<8x128xbf16>
    %cst_26 = arith.constant dense<0.000000e+00> : vector<8x128xf32>
    %78 = tpu.matmul %76, %77, %cst_26 {dimension_numbers = #tpu.dot_dimension_numbers<[1], [0], [0], [1], [0, 0, 1, 1], [], []>} : vector<8x8xbf16>, vector<8x128xbf16>, vector<8x128xf32> -> vector<8x128xf32>
    %79 = arith.addf %58, %78 : vector<8x128xf32>
    %80 = vector.extract_strided_slice %12 {offsets = [0, 24], sizes = [8, 8], strides = [1, 1]} : vector<8x128xf32> to vector<8x8xf32>
    %81 = arith.truncf %80 : vector<8x8xf32> to vector<8x8xbf16>
    %82 = vector.extract_strided_slice %13 {offsets = [0, 24], sizes = [8, 8], strides = [1, 1]} : vector<8x128xbf16> to vector<8x8xbf16>
    %83 = vector.extract_strided_slice %14 {offsets = [0, 24], sizes = [8, 8], strides = [1, 1]} : vector<8x128xbf16> to vector<8x8xbf16>
    %cst_27 = arith.constant dense<0.000000e+00> : vector<8x8xf32>
    %84 = tpu.matmul %81, %82, %cst_27 {dimension_numbers = #tpu.dot_dimension_numbers<[1], [1], [0], [0], [0, 0, 1, 0], [], []>} : vector<8x8xbf16>, vector<8x8xbf16>, vector<8x8xf32> -> vector<8x8xf32>
    %cst_28 = arith.constant dense<0xFF800000> : vector<8xf32>
    %85 = vector.multi_reduction <maximumf>, %84, %cst_28 [1] : vector<8x8xf32> to vector<8xf32>
    %86 = vector.shape_cast %85 : vector<8xf32> to vector<8x1xf32>
    %87 = vector.broadcast %86 : vector<8x1xf32> to vector<8x8xf32>
    %88 = arith.subf %84, %87 : vector<8x8xf32>
    %89 = math.exp %88 : vector<8x8xf32>
    %cst_29 = arith.constant dense<0.000000e+00> : vector<8xf32>
    %90 = vector.multi_reduction <add>, %89, %cst_29 [1] : vector<8x8xf32> to vector<8xf32>
    %91 = vector.shape_cast %90 : vector<8xf32> to vector<8x1xf32>
    %92 = tpu.reciprocal %91 {approx = true} : vector<8x1xf32> -> vector<8x1xf32>
    %93 = vector.broadcast %92 : vector<8x1xf32> to vector<8x8xf32>
    %94 = arith.mulf %89, %93 : vector<8x8xf32>
    %95 = arith.truncf %94 : vector<8x8xf32> to vector<8x8xbf16>
    %cst_30 = arith.constant dense<0.000000e+00> : vector<8x8xf32>
    %96 = tpu.matmul %95, %83, %cst_30 {dimension_numbers = #tpu.dot_dimension_numbers<[1], [0], [0], [1], [0, 0, 1, 1], [], []>} : vector<8x8xbf16>, vector<8x8xbf16>, vector<8x8xf32> -> vector<8x8xf32>
    %97 = arith.truncf %96 : vector<8x8xf32> to vector<8x8xbf16>
    %98 = vector.extract_strided_slice %15 {offsets = [24, 0], sizes = [8, 128], strides = [1, 1]} : vector<128x128xbf16> to vector<8x128xbf16>
    %cst_31 = arith.constant dense<0.000000e+00> : vector<8x128xf32>
    %99 = tpu.matmul %97, %98, %cst_31 {dimension_numbers = #tpu.dot_dimension_numbers<[1], [0], [0], [1], [0, 0, 1, 1], [], []>} : vector<8x8xbf16>, vector<8x128xbf16>, vector<8x128xf32> -> vector<8x128xf32>
    %100 = arith.addf %79, %99 : vector<8x128xf32>
    %101 = arith.addf %7, %100 : vector<8x128xf32>
    %c0_32 = arith.constant 0 : index
    %c0_33 = arith.constant 0 : index
    %102 = vector.load %arg7[%c0_32, %c0_33] : memref<1x128xf32, #tpu.memory_space<vmem>>, vector<1x128xf32>
    %c0_34 = arith.constant 0 : index
    %c0_35 = arith.constant 0 : index
    %103 = vector.load %arg8[%c0_34, %c0_35] : memref<1x128xf32, #tpu.memory_space<vmem>>, vector<1x128xf32>
    %cst_36 = arith.constant dense<0.000000e+00> : vector<8xf32>
    %104 = vector.multi_reduction <add>, %101, %cst_36 [1] : vector<8x128xf32> to vector<8xf32>
    %105 = vector.shape_cast %104 : vector<8xf32> to vector<8x1xf32>
    %cst_37 = arith.constant 3.125000e-02 : f32
    %106 = vector.broadcast %cst_37 : f32 to vector<8x1xf32>
    %107 = arith.mulf %105, %106 : vector<8x1xf32>
    %108 = arith.mulf %101, %101 : vector<8x128xf32>
    %cst_38 = arith.constant dense<0.000000e+00> : vector<8xf32>
    %109 = vector.multi_reduction <add>, %108, %cst_38 [1] : vector<8x128xf32> to vector<8xf32>
    %110 = vector.shape_cast %109 : vector<8xf32> to vector<8x1xf32>
    %cst_39 = arith.constant 3.125000e-02 : f32
    %111 = vector.broadcast %cst_39 : f32 to vector<8x1xf32>
    %112 = arith.mulf %110, %111 : vector<8x1xf32>
    %113 = arith.mulf %107, %107 : vector<8x1xf32>
    %114 = arith.subf %112, %113 : vector<8x1xf32>
    %115 = vector.broadcast %107 : vector<8x1xf32> to vector<8x128xf32>
    %116 = arith.subf %101, %115 : vector<8x128xf32>
    %cst_40 = arith.constant 9.99999997E-7 : f32
    %117 = vector.broadcast %cst_40 : f32 to vector<8x1xf32>
    %118 = arith.addf %114, %117 : vector<8x1xf32>
    %119 = math.rsqrt %118 : vector<8x1xf32>
    %120 = vector.broadcast %119 : vector<8x1xf32> to vector<8x128xf32>
    %121 = arith.mulf %116, %120 : vector<8x128xf32>
    %122 = vector.broadcast %102 : vector<1x128xf32> to vector<8x128xf32>
    %123 = arith.mulf %121, %122 : vector<8x128xf32>
    %124 = vector.broadcast %103 : vector<1x128xf32> to vector<8x128xf32>
    %125 = arith.addf %123, %124 : vector<8x128xf32>
    %126 = arith.truncf %125 : vector<8x128xf32> to vector<8x128xbf16>
    %c0_41 = arith.constant 0 : index
    %c0_42 = arith.constant 0 : index
    %127 = vector.load %arg10[%c0_41, %c0_42] : memref<1x128xf32, #tpu.memory_space<vmem>>, vector<1x128xf32>
    %cst_43 = arith.constant 0.000000e+00 : f32
    %128 = vector.broadcast %cst_43 : f32 to vector<8x128xf32>
    %c0_44 = arith.constant 0 : index
    %c0_45 = arith.constant 0 : index
    %129 = vector.load %arg9[%c0_44, %c0_45] : memref<128x128xbf16, #tpu.memory_space<vmem>>, vector<128x128xbf16>
    %cst_46 = arith.constant dense<0.000000e+00> : vector<8x128xf32>
    %130 = tpu.matmul %126, %129, %cst_46 {dimension_numbers = #tpu.dot_dimension_numbers<[1], [0], [0], [1], [0, 0, 1, 1], [], []>} : vector<8x128xbf16>, vector<128x128xbf16>, vector<8x128xf32> -> vector<8x128xf32>
    %131 = vector.broadcast %127 : vector<1x128xf32> to vector<8x128xf32>
    %132 = arith.addf %130, %131 : vector<8x128xf32>
    %cst_47 = arith.constant 0.000000e+00 : f32
    %133 = vector.broadcast %cst_47 : f32 to vector<8x128xf32>
    %134 = arith.maximumf %132, %133 : vector<8x128xf32>
    %135 = arith.truncf %134 : vector<8x128xf32> to vector<8x128xbf16>
    %c0_48 = arith.constant 0 : index
    %c0_49 = arith.constant 0 : index
    %136 = vector.load %arg11[%c0_48, %c0_49] : memref<128x128xbf16, #tpu.memory_space<vmem>>, vector<128x128xbf16>
    %cst_50 = arith.constant dense<0.000000e+00> : vector<8x128xf32>
    %137 = tpu.matmul %135, %136, %cst_50 {dimension_numbers = #tpu.dot_dimension_numbers<[1], [0], [0], [1], [0, 0, 1, 1], [], []>} : vector<8x128xbf16>, vector<128x128xbf16>, vector<8x128xf32> -> vector<8x128xf32>
    %138 = arith.addf %128, %137 : vector<8x128xf32>
    %c0_51 = arith.constant 0 : index
    %c0_52 = arith.constant 0 : index
    %139 = vector.load %arg12[%c0_51, %c0_52] : memref<1x128xf32, #tpu.memory_space<vmem>>, vector<1x128xf32>
    %140 = vector.broadcast %139 : vector<1x128xf32> to vector<8x128xf32>
    %141 = arith.addf %138, %140 : vector<8x128xf32>
    %142 = arith.addf %125, %141 : vector<8x128xf32>
    %c0_53 = arith.constant 0 : index
    %c0_54 = arith.constant 0 : index
    %143 = vector.load %arg13[%c0_53, %c0_54] : memref<1x128xf32, #tpu.memory_space<vmem>>, vector<1x128xf32>
    %c0_55 = arith.constant 0 : index
    %c0_56 = arith.constant 0 : index
    %144 = vector.load %arg14[%c0_55, %c0_56] : memref<1x128xf32, #tpu.memory_space<vmem>>, vector<1x128xf32>
    %cst_57 = arith.constant dense<0.000000e+00> : vector<8xf32>
    %145 = vector.multi_reduction <add>, %142, %cst_57 [1] : vector<8x128xf32> to vector<8xf32>
    %146 = vector.shape_cast %145 : vector<8xf32> to vector<8x1xf32>
    %cst_58 = arith.constant 3.125000e-02 : f32
    %147 = vector.broadcast %cst_58 : f32 to vector<8x1xf32>
    %148 = arith.mulf %146, %147 : vector<8x1xf32>
    %149 = arith.mulf %142, %142 : vector<8x128xf32>
    %cst_59 = arith.constant dense<0.000000e+00> : vector<8xf32>
    %150 = vector.multi_reduction <add>, %149, %cst_59 [1] : vector<8x128xf32> to vector<8xf32>
    %151 = vector.shape_cast %150 : vector<8xf32> to vector<8x1xf32>
    %cst_60 = arith.constant 3.125000e-02 : f32
    %152 = vector.broadcast %cst_60 : f32 to vector<8x1xf32>
    %153 = arith.mulf %151, %152 : vector<8x1xf32>
    %154 = arith.mulf %148, %148 : vector<8x1xf32>
    %155 = arith.subf %153, %154 : vector<8x1xf32>
    %156 = vector.broadcast %148 : vector<8x1xf32> to vector<8x128xf32>
    %157 = arith.subf %142, %156 : vector<8x128xf32>
    %cst_61 = arith.constant 9.99999997E-7 : f32
    %158 = vector.broadcast %cst_61 : f32 to vector<8x1xf32>
    %159 = arith.addf %155, %158 : vector<8x1xf32>
    %160 = math.rsqrt %159 : vector<8x1xf32>
    %161 = vector.broadcast %160 : vector<8x1xf32> to vector<8x128xf32>
    %162 = arith.mulf %157, %161 : vector<8x128xf32>
    %163 = vector.broadcast %143 : vector<1x128xf32> to vector<8x128xf32>
    %164 = arith.mulf %162, %163 : vector<8x128xf32>
    %165 = vector.broadcast %144 : vector<1x128xf32> to vector<8x128xf32>
    %166 = arith.addf %164, %165 : vector<8x128xf32>
    %c0_62 = arith.constant 0 : index
    %c0_63 = arith.constant 0 : index
    %c0_64 = arith.constant 0 : index
    %167 = vector.load %arg15[%c0_62, %c0_63, %c0_64] : memref<1x8x128xf32, #tpu.memory_space<vmem>>, vector<1x8x128xf32>
    %168 = vector.shape_cast %167 : vector<1x8x128xf32> to vector<8x128xf32>
    %169 = vector.shape_cast %166 : vector<8x128xf32> to vector<1x8x128xf32>
    tpu.vector_store %arg15[%c0_62, %c0_63, %c0_64], %169 {strides = array<i32>} : memref<1x8x128xf32, #tpu.memory_space<vmem>>, vector<1x8x128xf32>,
    return
  }
  func.func @transform_0(%arg0: i32, %arg1: i32) -> (i32, i32, i32) {
    %c0_i32 = arith.constant 0 : i32
    %c0_i32_0 = arith.constant 0 : i32
    %c0_i32_1 = arith.constant 0 : i32
    return %arg0, %c0_i32, %c0_i32_0 : i32, i32, i32
  }
  func.func @transform_1(%arg0: i32, %arg1: i32) -> (i32, i32) {
    %c0_i32 = arith.constant 0 : i32
    %c0_i32_0 = arith.constant 0 : i32
    %c0_i32_1 = arith.constant 0 : i32
    return %c0_i32, %c0_i32_0 : i32, i32
  }
  func.func @transform_2(%arg0: i32, %arg1: i32) -> (i32, i32) {
    %c0_i32 = arith.constant 0 : i32
    %c0_i32_0 = arith.constant 0 : i32
    %c0_i32_1 = arith.constant 0 : i32
    return %c0_i32, %c0_i32_0 : i32, i32
  }
  func.func @transform_3(%arg0: i32, %arg1: i32) -> (i32, i32) {
    %c0_i32 = arith.constant 0 : i32
    %c0_i32_0 = arith.constant 0 : i32
    %c0_i32_1 = arith.constant 0 : i32
    return %c0_i32, %c0_i32_0 : i32, i32
  }
  func.func @transform_4(%arg0: i32, %arg1: i32) -> (i32, i32) {
    %c0_i32 = arith.constant 0 : i32
    %c0_i32_0 = arith.constant 0 : i32
    %c0_i32_1 = arith.constant 0 : i32
    return %c0_i32, %c0_i32_0 : i32, i32
  }
  func.func @transform_5(%arg0: i32, %arg1: i32) -> (i32, i32) {
    %c0_i32 = arith.constant 0 : i32
    %c0_i32_0 = arith.constant 0 : i32
    %c0_i32_1 = arith.constant 0 : i32
    return %c0_i32, %c0_i32_0 : i32, i32
  }
  func.func @transform_6(%arg0: i32, %arg1: i32) -> (i32, i32) {
    %c0_i32 = arith.constant 0 : i32
    %c0_i32_0 = arith.constant 0 : i32
    %c0_i32_1 = arith.constant 0 : i32
    return %c0_i32, %c0_i32_0 : i32, i32
  }
  func.func @transform_7(%arg0: i32, %arg1: i32) -> (i32, i32) {
    %c0_i32 = arith.constant 0 : i32
    %c0_i32_0 = arith.constant 0 : i32
    %c0_i32_1 = arith.constant 0 : i32
    return %c0_i32, %c0_i32_0 : i32, i32
  }
  func.func @transform_8(%arg0: i32, %arg1: i32) -> (i32, i32) {
    %c0_i32 = arith.constant 0 : i32
    %c0_i32_0 = arith.constant 0 : i32
    %c0_i32_1 = arith.constant 0 : i32
    return %c0_i32, %c0_i32_0 : i32, i32
  }
  func.func @transform_9(%arg0: i32, %arg1: i32) -> (i32, i32) {
    %c0_i32 = arith.constant 0 : i32
    %c0_i32_0 = arith.constant 0 : i32
    %c0_i32_1 = arith.constant 0 : i32
    return %c0_i32, %c0_i32_0 : i32, i32
  }
  func.func @transform_10(%arg0: i32, %arg1: i32) -> (i32, i32) {
    %c0_i32 = arith.constant 0 : i32
    %c0_i32_0 = arith.constant 0 : i32
    %c0_i32_1 = arith.constant 0 : i32
    return %c0_i32, %c0_i32_0 : i32, i32
  }
  func.func @transform_11(%arg0: i32, %arg1: i32) -> (i32, i32) {
    %c0_i32 = arith.constant 0 : i32
    %c0_i32_0 = arith.constant 0 : i32
    %c0_i32_1 = arith.constant 0 : i32
    return %c0_i32, %c0_i32_0 : i32, i32
  }
  func.func @transform_12(%arg0: i32, %arg1: i32) -> (i32, i32) {
    %c0_i32 = arith.constant 0 : i32
    %c0_i32_0 = arith.constant 0 : i32
    %c0_i32_1 = arith.constant 0 : i32
    return %c0_i32, %c0_i32_0 : i32, i32
  }
  func.func @transform_13(%arg0: i32, %arg1: i32) -> (i32, i32, i32) {
    %c0_i32 = arith.constant 0 : i32
    %c0_i32_0 = arith.constant 0 : i32
    return %arg0, %arg1, %c0_i32 : i32, i32, i32
  }
}

</mosaic_0001>

<bundles_post_ra>
// kernel: encoder_layer.1
= control target key start
LH: loop header
LB: loop body
LE: loop exit
PB: predicated region body
PF: predicated region fallthrough
CT: control target
= control target key end

     0   :  { %s3174_s0 = inlined_call_operand.vmem [shape: f32[2,8,128], index: 0, kind: input, shape index: {}]   ;;  %s3175_s1 = inlined_call_operand.vmem [shape: bf16[128,128], index: 1, kind: input, shape index: {}]   ;;  %s3176_s2 = inlined_call_operand.hbm [shape: bf16[128,128], index: 2, kind: input, shape index: {}]   ;;  %s3177_s3 = inlined_call_operand.hbm [shape: bf16[128,128], index: 3, kind: input, shape index: {}]   ;;  %s3178_s4 = inlined_call_operand.hbm [shape: bf16[128,128], index: 4, kind: input, shape index: {}]   ;;  %s3179_s5 = inlined_call_operand.vmem [shape: f32[1,128], index: 5, kind: input, shape index: {}]   ;;  %s3180_s6 = inlined_call_operand.vmem [shape: f32[1,128], index: 6, kind: input, shape index: {}]   ;;  %s3181_s7 = inlined_call_operand.hbm [shape: bf16[128,128], index: 7, kind: input, shape index: {}]   ;;  %s3182_s8 = inlined_call_operand.vmem [shape: f32[1,128], index: 8, kind: input, shape index: {}]   ;;  %s3183_s9 = inlined_call_operand.hbm [shape: bf16[128,128], index: 9, kind: input, shape index: {}]   ;;  %s3184_s10 = inlined_call_operand.vmem [shape: f32[1,128], index: 10, kind: input, shape index: {}]   ;;  %s3185_s11 = inlined_call_operand.vmem [shape: f32[1,128], index: 11, kind: input, shape index: {}]   ;;  %s3186_s12 = inlined_call_operand.vmem [shape: f32[1,128], index: 12, kind: input, shape index: {}]   ;;  %s3187_s13 = inlined_call_operand.hbm [shape: f32[2,8,128], index: 13, kind: output, shape index: {}]  }
   0x1   :  { %3202 = sst [smem:[#allocation26_spill]] %s3177_s3 }
   0x2   :  { %3203 = sst [smem:[#allocation27_spill]] %s3185_s11 }
   0x3   :  { %3204 = sst [smem:[#allocation28_spill]] %s3186_s12 }
   0x4   :  { %3205 = sst [smem:[#allocation29_spill]] %s3187_s13 }
   0x5   :  { %18 = vsyncpa [#allocation5], 0 }
   0x6   :  { %19 = vsyncpa [#allocation8], 0 }
   0x7   :  { %20 = vsyncpa [#allocation11], 0 }
   0x8   :  { %21 = vsyncpa [#allocation6], 0 }
   0x9   :  { %23 = vsyncpa [#allocation6 + $0x1], 0  ;;  %s2724_s25 = smov 0   ;;  %s2726_s26 = smov 0  }
   0xa   :  { %s2728_s27 = smov 0   ;;  %s2730_s28 = smov 0  }
   0xb   :  { %s2732_s29 = smov 0   ;;  %s2734_s30 = smov 0  }
   0xc LB: > { %3206 = sst [smem:[#allocation18_spill]] %s2619_s25  ;;  %s1912_s14 = sadd.s32 4294967295, %s2639_s30   ;;  %s2639_s30 = sphi %s2734_s30, %s29_s30   ;;  %s2635_s29 = sphi %s2732_s29, %s3235_s29   ;;  %s2631_s28 = sphi %s2730_s28, %s3238_s28   ;;  %s2627_s27 = sphi %s2728_s27, %s3233_s27   ;;  %s2623_s26 = sphi %s2726_s26, %s3237_s26   ;;  %s2619_s25 = sphi %s2724_s25, %s3236_s25  }
   0xd   : > { %3207 = sst [smem:[#allocation19_spill]] %s2627_s27  ;;  %s1913_s15 = sadd.s32 4294967294, %s2639_s30  }
   0xe   : > { %3208 = sst [smem:[#allocation20_spill]] %s2635_s29  ;;  %s41_s16 = sadd.s32 1, %s2635_s29 }
   0xf   : > { %3209 = sst [smem:[#allocation21_spill]] %s2639_s30  ;;  %s328_s17 = sadd.s32 1, %s2627_s27 }
  0x10   : > { %p43_p0 = scmp.ge.s32.totalorder %s41_s16, 2  ;;  %p338_p1 = scmp.ne.s32.totalorder %s2627_s27, %s2623_s26 }
  0x11   : > { %p339_p2 = scmp.eq.s32.totalorder %s1912_s14, 1  ;;  %p344_p3 = scmp.ne.s32.totalorder %s2623_s26, %s2619_s25 }
  0x12   : > { %s3240_s16 = smov (%p43_p0, %s41_s16), 0  ;;  %p345_p5 = scmp.eq.s32.totalorder %s1913_s15, 1 }
  0x13   : > { %3210 = sst [smem:[#allocation22_spill]] %s3240_s16  ;;  %p2764_p4 = por %p339_p2, %p338_p1 }
  0x14   : > { %s323_s19 = ssub.s32 %s2635_s29, %s3240_s16  ;;  %p1914_p6 = scmp.ge.s32.totalorder %s2639_s30, 1 }
  0x15   : > { %s3211_s18 = scalar_select %p2764_p4, 1, 0 }
  0x16   : > { %p326_p7 = scmp.eq.s32.totalorder %s323_s19, 0  ;;  %p2771_p8 = por %p345_p5, %p344_p3 }
  0x17   : > { %3212 = sst [smem:[#allocation23_spill]] %s3211_s18  ;;  %p352_p9 = scmp.lt.s32.totalorder %s2639_s30, 3 }
  0x18   : > { %s3213_s20 = scalar_select %p2771_p8, 1, 0 }
  0x19   : > { %s2777_s21 = scalar_select %p326_p7, %s2627_s27, %s328_s17  }
  0x1a   : > { %3214 = sst [smem:[#allocation24_spill]] %s3213_s20  ;;  %p2779_p10 = pnand %p1914_p6, %p352_p9 }
  0x1b   : > { %3215 = sst [smem:[#allocation25_spill]] %s2777_s21  ;;  %p2783_p11 = scmp.eq.s32.totalorder %s1912_s14, 0 }
  0x1c   : > { %s3216_s22 = scalar_select %p2779_p10, 1, 0 }
  0x1d   : > { %s3217_s23 = scalar_select %p2783_p11, 1, 0 }
  0x1e   : > { %p2256_p12 = pneg %p2779_p10  ;;  %s2641_s24 = smov [#allocation7]  }
  0x1f   : > { %s380_s15 = sshll.u32 %s2641_s24, 4  ;;  %s2642_s17 = smov [#allocation10]   ;;  %s381_s15 = int_to_ptr.vmem [resolvable:$true] %s380_s15 }
  0x20   : > { %p2791_p13 = pnand %p2783_p11, %p2256_p12  ;;  %s412_s16 = sshll.u32 %s2642_s17, 4  ;;  %s2795_s16 = int_to_ptr.vmem [resolvable:$true] %s412_s16 }
  0x21   : > { %s3219_s3 = sld [smem:[#allocation26_spill]] }
  0x22   : > { %p2805_p1 = pneg %p2791_p13 }
  0x27   : > { %s2409_s21 = scalar_lea.hbm %s3219_s3, 1024 }
  0x28   : > { %p2410_p0 = scmp.ne.s32.totalorder %s3219_s3, %s2409_s21  ;;  %p2416_p5 = scmp.lt.u32.totalorder %s2409_s21, %s3219_s3 }
  0x2a   : > { %p2412_p2 = pnand %p2805_p1, %p2410_p0 }
  0x2c   : > { %p2413_p3 = pneg %p2412_p2 }
  0x2e   : > { %p2418_p6 = pnand %p2416_p5, %p2413_p3 }
  0x30   : > { %2421 = shalt.err (!%p2418_p6)
}
  0x31   : > { %s2422_s29 = scalar_lea.vmem %s381_s15, 1024  ;;  %p2430_p8 = scmp.lt.s32.totalorder %s381_s15, %s381_s15 }
  0x32   : > { %p2423_p7 = scmp.ne.s32.totalorder %s381_s15, %s2422_s29  ;;  %p2431_p4 = scmp.lt.s32.totalorder %s2422_s29, %s2422_s29 }
  0x34   : > { %p2425_p9 = pnand %p2423_p7, %p2805_p1  ;;  %p2432_p11 = por %p2431_p4, %p2430_p8 }
  0x36   : > { %p2426_p12 = pneg %p2425_p9 }
  0x38   : > { %p2433_p10 = pnand %p2432_p11, %p2426_p12 }
  0x3a   : > { %2436 = shalt.err (!%p2433_p10)
}
  0x3b   : > { %s2643_s27 = smov 64   ;;  %s2644_s20 = smov 4  }
  0x3c   : > { %2262 = dma.hbm_to_vmem [thread:$0]  (!%p2791_p13), %s3219_s3, 1024, %s381_s15, [#allocation8], %s2643_s27, %s2643_s27, %s2644_s20  }
  0x3d   : > { %s2437_s30 = scalar_lea.hbm %s3181_s7, 1024 }
  0x3e   : > { %p2438_p4 = scmp.ne.s32.totalorder %s3181_s7, %s2437_s30  ;;  %p2444_p11 = scmp.lt.u32.totalorder %s2437_s30, %s3181_s7 }
  0x40   : > { %p2440_p8 = pnand %p2438_p4, %p2805_p1 }
  0x42   : > { %p2441_p10 = pneg %p2440_p8 }
  0x44   : > { %p2446_p0 = pnand %p2444_p11, %p2441_p10 }
  0x46   : > { %2449 = shalt.err (!%p2446_p0)
}
  0x47   : > { %s2450_s15 = scalar_lea.vmem %s2795_s16, 1024  ;;  %p2458_p6 = scmp.lt.s32.totalorder %s2795_s16, %s2795_s16 }
  0x48   : > { %p2451_p2 = scmp.ne.s32.totalorder %s2795_s16, %s2450_s15  ;;  %p2459_p7 = scmp.lt.s32.totalorder %s2450_s15, %s2450_s15 }
  0x4a   : > { %p2453_p3 = pnand %p2451_p2, %p2805_p1  ;;  %p2460_p9 = por %p2459_p7, %p2458_p6 }
  0x4c   : > { %p2454_p5 = pneg %p2453_p3 }
  0x4e   : > { %p2461_p12 = pnand %p2460_p9, %p2454_p5 }
  0x50   : > { %2464 = shalt.err (!%p2461_p12)
}
  0x51   : > { %2268 = dma.hbm_to_vmem [thread:$0]  (!%p2791_p13), %s3181_s7, 1024, %s2795_s16, [#allocation11], %s2643_s27, %s2643_s27, %s2644_s20  }
  0x52   : > { %s2645_s13 = smov [#allocation4]   ;;  %s2646_s25 = smov [#allocation9]  }
  0x53   : > { %s367_s30 = sshll.u32 %s2645_s13, 4  ;;  %s393_s21 = sshll.u32 %s2646_s25, 4  ;;  %s368_s30 = int_to_ptr.vmem [resolvable:$true] %s367_s30  ;;  %s394_s21 = int_to_ptr.vmem [resolvable:$true] %s393_s21 }
  0x54   : > { %s2465_s29 = scalar_lea.hbm %s3176_s2, 1024 }
  0x55   : > { %p2466_p4 = scmp.ne.s32.totalorder %s3176_s2, %s2465_s29  ;;  %p2472_p11 = scmp.lt.u32.totalorder %s2465_s29, %s3176_s2 }
  0x57   : > { %p2468_p8 = pnand %p2466_p4, %p2805_p1 }
  0x59   : > { %p2469_p10 = pneg %p2468_p8 }
  0x5b   : > { %p2474_p0 = pnand %p2472_p11, %p2469_p10 }
  0x5d   : > { %2477 = shalt.err (!%p2474_p0)
}
  0x5e   : > { %s2478_s16 = scalar_lea.vmem %s368_s30, 1024  ;;  %p2486_p6 = scmp.lt.s32.totalorder %s368_s30, %s368_s30 }
  0x5f   : > { %p2479_p2 = scmp.ne.s32.totalorder %s368_s30, %s2478_s16  ;;  %p2487_p7 = scmp.lt.s32.totalorder %s2478_s16, %s2478_s16 }
  0x61   : > { %p2481_p3 = pnand %p2479_p2, %p2805_p1  ;;  %p2488_p9 = por %p2487_p7, %p2486_p6 }
  0x63   : > { %p2482_p5 = pneg %p2481_p3 }
  0x65   : > { %p2489_p12 = pnand %p2488_p9, %p2482_p5 }
  0x67   : > { %2492 = shalt.err (!%p2489_p12)
}
  0x68   : > { %2259 = dma.hbm_to_vmem [thread:$0]  (!%p2791_p13), %s3176_s2, 1024, %s368_s30, [#allocation5], %s2643_s27, %s2643_s27, %s2644_s20  }
  0x69   : > { %s2493_s25 = scalar_lea.hbm %s3178_s4, 1024 }
  0x6a   : > { %p2494_p4 = scmp.ne.s32.totalorder %s3178_s4, %s2493_s25  ;;  %p2500_p11 = scmp.lt.u32.totalorder %s2493_s25, %s3178_s4 }
  0x6c   : > { %p2496_p8 = pnand %p2494_p4, %p2805_p1 }
  0x6e   : > { %p2497_p10 = pneg %p2496_p8 }
  0x70   : > { %p2502_p0 = pnand %p2500_p11, %p2497_p10 }
  0x72   : > { %2505 = shalt.err (!%p2502_p0)
}
  0x73   : > { %s2506_s11 = scalar_lea.vmem %s394_s21, 1024  ;;  %p2514_p6 = scmp.lt.s32.totalorder %s394_s21, %s394_s21 }
  0x74   : > { %p2507_p2 = scmp.ne.s32.totalorder %s394_s21, %s2506_s11  ;;  %p2515_p7 = scmp.lt.s32.totalorder %s2506_s11, %s2506_s11 }
  0x76   : > { %p2509_p3 = pnand %p2507_p2, %p2805_p1  ;;  %p2516_p9 = por %p2515_p7, %p2514_p6 }
  0x78   : > { %p2510_p5 = pneg %p2509_p3 }
  0x7a   : > { %p2517_p12 = pnand %p2516_p9, %p2510_p5 }
  0x7c   : > { %2520 = shalt.err (!%p2517_p12)
}
  0x7d   : > { %2265 = dma.hbm_to_vmem [thread:$0]  (!%p2791_p13), %s3178_s4, 1024, %s394_s21, [#allocation8], %s2643_s27, %s2643_s27, %s2644_s20  }
  0x7e   : > { %s2647_s3 = smov [#allocation12]   ;;  %s2521_s25 = scalar_lea.hbm %s3183_s9, 1024 }
  0x7f   : > { %s428_s18 = sshll.u32 %s2647_s3, 4  ;;  %p2522_p4 = scmp.ne.s32.totalorder %s3183_s9, %s2521_s25  ;;  %s429_s18 = int_to_ptr.vmem [resolvable:$true] %s428_s18 }
  0x80   : > { %p2528_p11 = scmp.lt.u32.totalorder %s2521_s25, %s3183_s9 }
  0x81   : > { %p2524_p8 = pnand %p2522_p4, %p2805_p1 }
  0x83   : > { %p2525_p10 = pneg %p2524_p8 }
  0x85   : > { %p2530_p0 = pnand %p2528_p11, %p2525_p10 }
  0x87   : > { %2533 = shalt.err (!%p2530_p0)
}
  0x88   : > { %s2534_s21 = scalar_lea.vmem %s429_s18, 1024  ;;  %p2542_p6 = scmp.lt.s32.totalorder %s429_s18, %s429_s18 }
  0x89   : > { %p2535_p2 = scmp.ne.s32.totalorder %s429_s18, %s2534_s21  ;;  %p2543_p7 = scmp.lt.s32.totalorder %s2534_s21, %s2534_s21 }
  0x8b   : > { %p2537_p3 = pnand %p2535_p2, %p2805_p1  ;;  %p2544_p9 = por %p2543_p7, %p2542_p6 }
  0x8d   : > { %p2538_p5 = pneg %p2537_p3 }
  0x8f   : > { %p2545_p12 = pnand %p2544_p9, %p2538_p5 }
  0x91   : > { %2548 = shalt.err (!%p2545_p12)
}
  0x92   : > { %2271 = dma.hbm_to_vmem [thread:$0]  (!%p2791_p13), %s3183_s9, 1024, %s429_s18, [#allocation11], %s2643_s27, %s2643_s27, %s2644_s20  }
  0x93   : > { %p3221_p4 = scmp.ne.s32.totalorder %s3216_s22, 0 }
  0x94   : > { %p3222_p1 = scmp.ne.s32.totalorder (!%p3221_p4), %s3217_s23, 0 }
  0x95   : > { %460 = sbr.rel (%p3221_p4) target bundleno = 4009 (0xfa9), region = 72 }
  0x9c   : > { %2602 = dma.done.wait (%p3222_p1), [#allocation5], 1024  }
  0x9d   : > { %2604 = vsyncadd (%p3222_p1), [#allocation5], 4294966272 }
  0x9e   : > { %2606 = dma.done.wait (%p3222_p1), [#allocation8], 2048  }
  0x9f   : > { %2608 = vsyncadd (%p3222_p1), [#allocation8], 4294965248 }
  0xa0   : > { %2610 = dma.done.wait (%p3222_p1), [#allocation11], 2048  }
  0xa1   : > { %2612 = vsyncadd (%p3222_p1), [#allocation11], 4294965248  ;;  %v2648_v0 = vmov 0.0   ;;  %vm2649_vm0 = vmmov 0   ;;  %v2347_v1 = vld [vmem:[#allocation4] sm:$0xff]   ;;  %v2348_v2 = vld [vmem:[#allocation4 + $0x8] sm:$0xff]  }
  0xa2   : > { %2062 = vmatprep.subr.bf16.mxu0 %v2648_v0  ;;  %2078 = vmatprep.mubr.msk.bf16.mxu0 %vm2649_vm0, %v2648_v0  ;;  %v2349_v3 = vld [vmem:[#allocation4 + $0x10] sm:$0xff]   ;;  %v2350_v4 = vld [vmem:[#allocation4 + $0x18] sm:$0xff]   ;;  %p519_p13 = scmp.lt.s32.totalorder %s2631_s28, 1  ;;  %v2351_v5 = vld [vmem:[#allocation4 + $0x20] sm:$0xff]   ;;  %vm858_vm1 = vcmask 64512   ;;  %s2650_s19 = smov 120  }
  0xa3   : > { %2082 = vmatprep.subr.bf16.mxu1 %v2648_v0  ;;  %2098 = vmatprep.mubr.msk.bf16.mxu1 %vm2649_vm0, %v2648_v0  ;;  %v2363_v6 = vld [vmem:[#allocation7] sm:$0xff]   ;;  %v2352_v7 = vld [vmem:[#allocation4 + $0x28] sm:$0xff]   ;;  %v2353_v9 = vld [vmem:[#allocation4 + $0x30] sm:$0xff]   ;;  %vm920_vm2 = vcmask 1043456   ;;  %s2651_s24 = smov 112   ;;  %s516_s17 = sand.u32 1, %s2623_s26  }
  0xa4   : > { %2063 = vmatpush3.bf16.msra.mxu0 %v2347_v1  ;;  %s520_s22 = scalar_select %p519_p13, %s2631_s28, 1  ;;  %2083 = vmatpush3.bf16.msra.mxu1 %v2363_v6  ;;  %v2364_v8 = vld [vmem:[#allocation7 + $0x8] sm:$0xff]   ;;  %v2365_v10 = vld [vmem:[#allocation7 + $0x10] sm:$0xff]   ;;  %v2354_v11 = vld [vmem:[#allocation4 + $0x38] sm:$0xff]  }
  0xa5   : > { %2064 = vmatprep.subr.bf16.mxu0 %v2648_v0  ;;  %2084 = vmatprep.subr.bf16.mxu1 %v2648_v0  ;;  %v2366_v13 = vld [vmem:[#allocation7 + $0x18] sm:$0xff]   ;;  %v2355_v14 = vld [vmem:[%s3175_s1] sm:$0xff]   ;;  %v2367_v16 = vld [vmem:[#allocation7 + $0x20] sm:$0xff]   ;;  %s1927_s29 = sshll.u32 %s516_s17, 3  ;;  %s3223_s15 = sld [smem:[#allocation23_spill]] }
  0xa6   : > { %s1928_s23 = sshll.u32 %s520_s22, 3  ;;  %v2356_v17 = vld [vmem:[%s3175_s1 + $0x8] sm:$0xff]   ;;  %v2368_v18 = vld [vmem:[#allocation7 + $0x28] sm:$0xff]   ;;  %v2357_v19 = vld [vmem:[%s3175_s1 + $0x10] sm:$0xff]   ;;  %s3224_s30 = sld [smem:[#allocation27_spill]] }
  0xa7   : > { %s522_s27 = scalar_lea.vmem %s3174_s0, %s1928_s23  ;;  %v2358_v20 = vld [vmem:[%s3175_s1 + $0x18] sm:$0xff]   ;;  %v2359_v21 = vld [vmem:[%s3175_s1 + $0x20] sm:$0xff]   ;;  %v2360_v22 = vld [vmem:[%s3175_s1 + $0x28] sm:$0xff]   ;;  %s3226_s18 = sld [smem:[#allocation29_spill]] }
  0xa8   : > { %2065 = vmatpush3.bf16.msra.mxu0 %v2348_v2  ;;  %2085 = vmatpush3.bf16.msra.mxu1 %v2364_v8  ;;  %v2945_v12 = vld [vmem:[%s522_s27] sm:$0xff]  ;;  %v2361_v23 = vld [vmem:[%s3175_s1 + $0x30] sm:$0xff]   ;;  %v2362_v24 = vld [vmem:[%s3175_s1 + $0x38] sm:$0xff]   ;;  %s2652_s27 = smov 104   ;;  %s1778_s13 = scalar_lea.sflag [#allocation6], %s516_s17 }
  0xa9   : > { %2066 = vmatprep.subr.bf16.mxu0 %v2648_v0  ;;  %2086 = vmatprep.subr.bf16.mxu1 %v2648_v0  ;;  %v529_v15 = vpack.c.bf16 %v2945_v12, %v2945_v12  ;;  %v2369_v25 = vld [vmem:[#allocation7 + $0x30] sm:$0xff]   ;;  %v2370_v26 = vld [vmem:[#allocation7 + $0x38] sm:$0xff]  }
  0xab   : > { %p3227_p10 = scmp.ne.s32.totalorder %s3223_s15, 0 }
  0xac   : > { %2067 = vmatpush3.bf16.msra.mxu0 %v2349_v3  ;;  %2087 = vmatpush3.bf16.msra.mxu1 %v2365_v10 }
  0xad   : > { %2068 = vmatprep.subr.bf16.mxu0 %v2648_v0  ;;  %2088 = vmatprep.subr.bf16.mxu1 %v2648_v0 }
  0xb0   : > { %2069 = vmatpush3.bf16.msra.mxu0 %v2350_v4  ;;  %2089 = vmatpush3.bf16.msra.mxu1 %v2366_v13 }
  0xb1   : > { %2070 = vmatprep.subr.bf16.mxu0 %v2648_v0  ;;  %2090 = vmatprep.subr.bf16.mxu1 %v2648_v0 }
  0xb4   : > { %2071 = vmatpush3.bf16.msra.mxu0 %v2351_v5  ;;  %2091 = vmatpush3.bf16.msra.mxu1 %v2367_v16 }
  0xb5   : > { %2072 = vmatprep.subr.bf16.mxu0 %v2648_v0  ;;  %2092 = vmatprep.subr.bf16.mxu1 %v2648_v0 }
  0xb8   : > { %2073 = vmatpush3.bf16.msra.mxu0 %v2352_v7  ;;  %2093 = vmatpush3.bf16.msra.mxu1 %v2368_v18 }
  0xb9   : > { %2074 = vmatprep.subr.bf16.mxu0 %v2648_v0  ;;  %2094 = vmatprep.subr.bf16.mxu1 %v2648_v0 }
  0xbc   : > { %2075 = vmatpush3.bf16.msra.mxu0 %v2353_v9  ;;  %2095 = vmatpush3.bf16.msra.mxu1 %v2369_v25 }
  0xbd   : > { %2076 = vmatprep.subr.bf16.mxu0 %v2648_v0  ;;  %2096 = vmatprep.subr.bf16.mxu1 %v2648_v0 }
  0xc0   : > { %2077 = vmatpush3.bf16.msra.mxu0 %v2354_v11  ;;  %2097 = vmatpush3.bf16.msra.mxu1 %v2370_v26 }
  0xc1   : > { %2102 = vmatprep.subr.bf16.mxu0 %v2648_v0  ;;  %2122 = vmatprep.subr.bf16.mxu1 %v2648_v0 }
  0xc3   : > { %2079 = vmatmul.mubr.bf16.vlgmr.msra.gmra.mrb[0].mxu0 %v529_v15  ;;  %2099 = vmatmul.mubr.bf16.vlgmr.msra.gmra.mrb[0].mxu1 %v529_v15 }
  0xc4   : > { %2103 = vmatpush3.bf16.msra.mxu0 %v2355_v14  ;;  %2118 = vmatprep.mubr.msk.bf16.mxu0 %vm2649_vm0, %v2648_v0 }
  0xc5   : > { %2104 = vmatprep.subr.bf16.mxu0 %v2648_v0  ;;  %2124 = vmatprep.mubr.msk.bf16.mxu1 %vm2649_vm0, %v2648_v0 }
  0xc8   : > { %2105 = vmatpush3.bf16.msra.mxu0 %v2356_v17 }
  0xc9   : > { %2106 = vmatprep.subr.bf16.mxu0 %v2648_v0 }
  0xcc   : > { %2107 = vmatpush3.bf16.msra.mxu0 %v2357_v19 }
  0xcd   : > { %2108 = vmatprep.subr.bf16.mxu0 %v2648_v0 }
  0xd0   : > { %2109 = vmatpush3.bf16.msra.mxu0 %v2358_v20  ;;  %v854_v20 = vld [vmem:[#allocation9 + $0x4] sm:$0xf] }
  0xd1   : > { %2110 = vmatprep.subr.bf16.mxu0 %v2648_v0 }
  0xd4   : > { %2111 = vmatpush3.bf16.msra.mxu0 %v2359_v21  ;;  %v1087_v21 = vsel %vm920_vm2, %v854_v20, 0 }
  0xd5   : > { %2112 = vmatprep.subr.bf16.mxu0 %v2648_v0 }
  0xd8   : > { %2113 = vmatpush3.bf16.msra.mxu0 %v2360_v22 }
  0xd9   : > { %2114 = vmatprep.subr.bf16.mxu0 %v2648_v0 }
  0xdc   : > { %2115 = vmatpush3.bf16.msra.mxu0 %v2361_v23 }
  0xdd   : > { %2116 = vmatprep.subr.bf16.mxu0 %v2648_v0 }
  0xe0   : > { %2117 = vmatpush3.bf16.msra.mxu0 %v2362_v24  ;;  %v853_v24 = vld [vmem:[#allocation9] sm:$0xf] }
  0xe1   : > { %2146 = vmatprep.subr.bf16.mxu0 %v2648_v0 }
  0xe3   : > { %2119 = vmatmul.mubr.bf16.vlgmr.msra.gmra.mrb[4].mxu0 %v529_v15 }
  0xe4   : > { %2148 = vmatprep.mubr.msk.bf16.mxu0 %vm2649_vm0, %v2648_v0  ;;  %2147 = vmatpush3.bf16.msra.mxu0 %v1087_v21 }
  0xe5   : > { %2158 = vmatprep.subr.bf16.mxu0 %v2648_v0 }
 0x196   : > { %v628_v27 = vpop.f32.mrb[0].mxu0  ;;  %v734_v41 = vpop.f32.mrb[0].mxu1 }
 0x197   : > { %v634_v28 = vpack.c.bf16 %v628_v27, %v628_v27  ;;  %v2080_v29 = vpop.f32.mrb[1].mxu0  ;;  %v740_v42 = vpack.c.bf16 %v734_v41, %v734_v41  ;;  %v2100_v43 = vpop.f32.mrb[1].mxu1  ;;  %v1133_v27 = vsel %vm920_vm2, %v853_v24, 0 }
 0x198   : > { %v631_v30 = vpop.f32.mrb[2].mxu0  ;;  %v737_v44 = vpop.f32.mrb[2].mxu1 }
 0x199   : > { %635 = vst [vmem:[#allocation2] sm:$0xf] %v634_v28  ;;  %v2081_v31 = vpop.f32.mrb[3].mxu0  ;;  %741 = vst [vmem:[#allocation3] sm:$0xf] %v740_v42  ;;  %v2101_v45 = vpop.f32.mrb[3].mxu1 }
 0x1a0   : > { %v851_v32 = vld [vmem:[#allocation2] sm:$0xf]  ;;  %v852_v46 = vld [vmem:[#allocation3] sm:$0xf] }
 0x1a1   : > { %v863_v33 = vsel %vm858_vm1, %v851_v32, 0  ;;  %v2997_v34 = vcombine.low %v851_v32, %v851_v32  ;;  %v922_v47 = vsel %vm920_vm2, %v852_v46, 0  ;;  %v3023_v11 = vcombine.low %v852_v46, %v852_v46 }
 0x1a2   : > { %2123 = vmatpush3.bf16.xpose.msra.mxu1 %v863_v33 }
 0x1a3   : > { %971 = vrot.lane.b32.xlu1 %v2997_v34, %s2650_s19  ;;  %2128 = vmatprep.subr.bf16.mxu1 %v2648_v0 }
 0x1b6   : > { %v844_v35 = vpop.f32.mrb[4].mxu0 }
 0x1b7   : > { %v850_v36 = vmul.f32 0.35355338, %v844_v35  ;;  %v2120_v37 = vpop.f32.mrb[5].mxu0 }
 0x1b8   : > { %v847_v38 = vpop.f32.mrb[6].mxu0 }
 0x1b9   : > { %v3002_v39 = vpack.c.bf16 %v850_v36, %v850_v36  ;;  %v2121_v40 = vpop.f32.mrb[7].mxu0 }
 0x1bb   : > { %966 = vrot.lane.b32.xlu1 %v3002_v39, %s2650_s19  ;;  %2125 = vmatmul.mubr.msk.bf16.vlgmr.msra.gmra.mrb[4].mxu1 %vm858_vm1, %v3002_v39 }
 0x1bc   : > { %2130 = vmatprep.mubr.msk.bf16.mxu1 %vm2649_vm0, %v2648_v0  ;;  %2129 = vmatpush3.bf16.msra.mxu1 %v922_v47 }
 0x1bd   : > { %2134 = vmatprep.subr.bf16.mxu1 %v2648_v0 }
 0x215   : > { %v972_v61 = vpop.permute.xlu1 %971 }
 0x216   : > { %v977_v63 = vsel %vm858_vm1, %v972_v61, 0 }
 0x22d   : > { %v967_v1 = vpop.permute.xlu1 %966 }
 0x28e   : > { %v899_v48 = vpop.f32.mrb[4].mxu1 }
 0x28f   : > { %v2126_v49 = vpop.f32.mrb[5].mxu1  ;;  %v905_v50 = vsel %vm858_vm1, %v899_v48, -inf }
 0x290   : > { %906 = vmax.xlane.f32.xlu0 %v905_v50  ;;  %v902_v51 = vpop.f32.mrb[6].mxu1 }
 0x291   : > { %v2127_v52 = vpop.f32.mrb[7].mxu1 }
 0x31d   : > { %v907_v53 = vpop.xlane.xlu0 %906 }
 0x31e   : > { %v908_v54 = vsub.f32 %v899_v48, %v907_v53 }
 0x320   : > { %v909_v55 = vmul.f32 1.442695, %v908_v54 }
 0x322   : > { %2389 = vpow2.f32 %v909_v55 }
 0x32c   : > { %v2390_v56 = vpop.eup %2389 }
 0x32d   : > { %v911_v57 = vsel %vm858_vm1, %v2390_v56, 0.0 }
 0x32e   : > { %912 = vadd.xlane.f32.xlu0 %v911_v57 }
 0x3bb   : > { %v913_v58 = vpop.xlane.xlu0 %912 }
 0x3bc   : > { %2391 = vrcp.f32 %v913_v58 }
 0x3c6   : > { %v2392_v59 = vpop.eup %2391 }
 0x3c7   : > { %v915_v60 = vmul.f32 %v2392_v59, %v2390_v56 }
 0x3c9   : > { %v916_v62 = vpack.c.bf16 %v915_v60, %v915_v60 }
 0x3cb   : > { %2131 = vmatmul.mubr.msk.bf16.vlgmr.msra.gmra.mrb[8].mxu1 %vm858_vm1, %v916_v62 }
 0x3cc   : > { %2135 = vmatpush3.bf16.xpose.msra.mxu1 %v977_v63  ;;  %2136 = vmatprep.mubr.msk.bf16.mxu1 %vm2649_vm0, %v2648_v0 }
 0x3cd   : > { %2140 = vmatprep.subr.bf16.mxu1 %v2648_v0 }
 0x3d3   : > { %2137 = vmatmul.mubr.msk.bf16.vlgmr.msra.gmra.mrb[12].mxu1 %vm858_vm1, %v967_v1 }
 0x3d4   : > { %2142 = vmatprep.mubr.msk.bf16.mxu1 %vm2649_vm0, %v2648_v0 }
 0x49e   : > { %v958_v2 = vpop.f32.mrb[8].mxu1 }
 0x49f   : > { %v2132_v3 = vpop.f32.mrb[9].mxu1  ;;  %v964_v29 = vpack.c.bf16 %v958_v2, %v958_v2 }
 0x4a0   : > { %v961_v4 = vpop.f32.mrb[10].mxu1 }
 0x4a1   : > { %v2133_v5 = vpop.f32.mrb[11].mxu1 }
 0x4a6   : > { %v1013_v6 = vpop.f32.mrb[12].mxu1 }
 0x4a7   : > { %v2138_v7 = vpop.f32.mrb[13].mxu1  ;;  %v1019_v8 = vsel %vm858_vm1, %v1013_v6, -inf }
 0x4a8   : > { %1020 = vmax.xlane.f32.xlu0 %v1019_v8  ;;  %v1016_v9 = vpop.f32.mrb[14].mxu1 }
 0x4a9   : > { %v2139_v10 = vpop.f32.mrb[15].mxu1 }
 0x4be   : > { %1034 = vrot.lane.b32.xlu0 %v3023_v11, %s2650_s19  ;;  %s3225_s19 = sld [smem:[#allocation28_spill]] }
 0x4c2   : > { %1177 = vrot.lane.b32.xlu0 %v2997_v34, %s2651_s24 }
 0x4c6   : > { %1175 = vrot.lane.b32.xlu0 %v3002_v39, %s2651_s24 }
 0x535   : > { %v1021_v13 = vpop.xlane.xlu0 %1020 }
 0x536   : > { %v1022_v14 = vsub.f32 %v1013_v6, %v1021_v13 }
 0x538   : > { %v1023_v15 = vmul.f32 1.442695, %v1022_v14 }
 0x539   : > { %v1035_v16 = vpop.permute.xlu0 %1034 }
 0x53a   : > { %2393 = vpow2.f32 %v1023_v15  ;;  %v1040_v17 = vsel %vm920_vm2, %v1035_v16, 0 }
 0x53b   : > { %2141 = vmatpush3.bf16.msra.mxu1 %v1040_v17 }
 0x53c   : > { %2152 = vmatprep.subr.bf16.mxu1 %v2648_v0 }
 0x53d   : > { %v1178_v31 = vpop.permute.xlu0 %1177 }
 0x53e   : > { %v1183_v37 = vsel %vm858_vm1, %v1178_v31, 0 }
 0x541   : > { %v1176_v42 = vpop.permute.xlu0 %1175 }
 0x544   : > { %v2394_v18 = vpop.eup %2393 }
 0x545   : > { %v1025_v19 = vsel %vm858_vm1, %v2394_v18, 0.0 }
 0x546   : > { %1026 = vadd.xlane.f32.xlu1 %v1025_v19 }
 0x557   : > { %1237 = vrot.lane.b32.xlu1 %v3023_v11, %s2651_s24  ;;  %s1990_s24 = sshll.u32 %s2631_s28, 7  ;;  %s2653_s28 = smov [#allocation13]  }
 0x558   : > { %s3127_s12 = scalar_lea.hbm %s3226_s18, %s1990_s24  ;;  %s2553_s14 = sshll.u32 %s2653_s28, 4  ;;  %s2554_s14 = int_to_ptr.vmem [resolvable:$false] %s2553_s14 }
 0x5d3   : > { %v1027_v22 = vpop.xlane.xlu1 %1026 }
 0x5d4   : > { %2395 = vrcp.f32 %v1027_v22 }
 0x5d7   : > { %v1238_v28 = vpop.permute.xlu1 %1237 }
 0x5d8   : > { %v1243_v30 = vsel %vm920_vm2, %v1238_v28, 0 }
 0x5de   : > { %v2396_v23 = vpop.eup %2395 }
 0x5df   : > { %v1029_v25 = vmul.f32 %v2396_v23, %v2394_v18  ;;  %v856_v23 = vld [vmem:[#allocation9 + $0xc] sm:$0xf] }
 0x5e0   : > { %v1448_v24 = vsel %vm920_vm2, %v856_v23, 0 }
 0x5e1   : > { %v1030_v26 = vpack.c.bf16 %v1029_v25, %v1029_v25 }
 0x5e3   : > { %2143 = vmatmul.mubr.msk.bf16.vlgmr.msra.gmra.mrb[16].mxu1 %vm858_vm1, %v1030_v26 }
 0x5e4   : > { %2153 = vmatpush3.bf16.msra.mxu1 %v1133_v27  ;;  %2154 = vmatprep.mubr.msk.bf16.mxu1 %vm2649_vm0, %v2648_v0 }
 0x5e5   : > { %2164 = vmatprep.subr.bf16.mxu1 %v2648_v0 }
 0x5eb   : > { %2155 = vmatmul.mubr.msk.bf16.vlgmr.msra.gmra.mrb[20].mxu1 %vm858_vm1, %v964_v29 }
 0x5ec   : > { %2165 = vmatpush3.bf16.msra.mxu1 %v1243_v30  ;;  %2166 = vmatprep.mubr.msk.bf16.mxu1 %vm2649_vm0, %v2648_v0 }
 0x5ed   : > { %2176 = vmatprep.subr.bf16.mxu1 %v2648_v0 }
 0x6b6   : > { %v1076_v32 = vpop.f32.mrb[16].mxu1 }
 0x6b7   : > { %v1082_v33 = vpack.c.bf16 %v1076_v32, %v1076_v32  ;;  %v2144_v35 = vpop.f32.mrb[17].mxu1 }
 0x6b8   : > { %v1079_v36 = vpop.f32.mrb[18].mxu1 }
 0x6b9   : > { %v2145_v38 = vpop.f32.mrb[19].mxu1  ;;  %2149 = vmatmul.mubr.msk.bf16.vlgmr.msra.gmra.mrb[8].mxu0 %vm858_vm1, %v1082_v33 }
 0x6ba   : > { %2159 = vmatpush3.bf16.xpose.msra.mxu0 %v1183_v37  ;;  %2160 = vmatprep.mubr.msk.bf16.mxu0 %vm2649_vm0, %v2648_v0 }
 0x6bb   : > { %2170 = vmatprep.subr.bf16.mxu0 %v2648_v0 }
 0x6be   : > { %v1169_v40 = vpop.f32.mrb[20].mxu1 }
 0x6bf   : > { %v2156_v41 = vpop.f32.mrb[21].mxu1 }
 0x6c0   : > { %v1172_v43 = vpop.f32.mrb[22].mxu1 }
 0x6c1   : > { %v2157_v44 = vpop.f32.mrb[23].mxu1  ;;  %2161 = vmatmul.mubr.msk.bf16.vlgmr.msra.gmra.mrb[12].mxu0 %vm858_vm1, %v1176_v42 }
 0x6c2   : > { %2172 = vmatprep.mubr.msk.bf16.mxu0 %vm2649_vm0, %v2648_v0 }
 0x78c   : > { %v1123_v45 = vpop.f32.mrb[8].mxu0 }
 0x78d   : > { %v3053_v46 = vadd.f32 %v1169_v40, %v1123_v45  ;;  %v2150_v47 = vpop.f32.mrb[9].mxu0  ;;  %v2373_v40 = vld [vmem:[#allocation10] sm:$0xff]  }
 0x78e   : > { %v1126_v48 = vpop.f32.mrb[10].mxu0 }
 0x78f   : > { %v2151_v49 = vpop.f32.mrb[11].mxu0  ;;  %v2374_v48 = vld [vmem:[#allocation10 + $0x8] sm:$0xff]  }
 0x790   : > { %v2375_v49 = vld [vmem:[#allocation10 + $0x10] sm:$0xff]  }
 0x794   : > { %v1219_v50 = vpop.f32.mrb[12].mxu0 }
 0x795   : > { %v2162_v51 = vpop.f32.mrb[13].mxu0  ;;  %v1225_v52 = vsel %vm858_vm1, %v1219_v50, -inf }
 0x796   : > { %1226 = vmax.xlane.f32.xlu0 %v1225_v52  ;;  %v1222_v53 = vpop.f32.mrb[14].mxu0  ;;  %v2377_v51 = vld [vmem:[#allocation10 + $0x20] sm:$0xff]   ;;  %v2378_v52 = vld [vmem:[#allocation10 + $0x28] sm:$0xff]  }
 0x797   : > { %v2163_v54 = vpop.f32.mrb[15].mxu0  ;;  %v2380_v53 = vld [vmem:[#allocation10 + $0x38] sm:$0xff]  }
 0x798   : > { %v2381_v54 = vld [vmem:[#allocation12] sm:$0xff]  }
 0x823   : > { %v1227_v55 = vpop.xlane.xlu0 %1226 }
 0x824   : > { %v1228_v56 = vsub.f32 %v1219_v50, %v1227_v55  ;;  %v2376_v50 = vld [vmem:[#allocation10 + $0x18] sm:$0xff]   ;;  %v2382_v55 = vld [vmem:[#allocation12 + $0x8] sm:$0xff]  }
 0x826   : > { %v1229_v57 = vmul.f32 1.442695, %v1228_v56  ;;  %v2383_v56 = vld [vmem:[#allocation12 + $0x10] sm:$0xff]  }
 0x828   : > { %2397 = vpow2.f32 %v1229_v57  ;;  %v2384_v57 = vld [vmem:[#allocation12 + $0x18] sm:$0xff]  }
 0x832   : > { %v2398_v58 = vpop.eup %2397 }
 0x833   : > { %v1231_v59 = vsel %vm858_vm1, %v2398_v58, 0.0 }
 0x834   : > { %1232 = vadd.xlane.f32.xlu1 %v1231_v59  ;;  %v2386_v59 = vld [vmem:[#allocation12 + $0x28] sm:$0xff]  }
 0x845   : > { %1335 = vrot.lane.b32.xlu1 %v2997_v34, %s2652_s27 }
 0x849   : > { %1333 = vrot.lane.b32.xlu1 %v3002_v39, %s2652_s27  ;;  %v855_v39 = vld [vmem:[#allocation9 + $0x8] sm:$0xf] }
 0x84a   : > { %v1290_v3 = vsel %vm920_vm2, %v855_v39, 0 }
 0x84b   : > { %2171 = vmatpush3.bf16.msra.mxu0 %v1290_v3 }
 0x84c   : > { %2182 = vmatprep.subr.bf16.mxu0 %v2648_v0 }
 0x8c1   : > { %v1233_v60 = vpop.xlane.xlu1 %1232 }
 0x8c2   : > { %2399 = vrcp.f32 %v1233_v60 }
 0x8c5   : > { %v1336_v63 = vpop.permute.xlu1 %1335 }
 0x8c6   : > { %v1341_v2 = vsel %vm858_vm1, %v1336_v63, 0 }
 0x8c9   : > { %v1334_v34 = vpop.permute.xlu1 %1333 }
 0x8cc   : > { %v2400_v61 = vpop.eup %2399 }
 0x8cd   : > { %v1235_v62 = vmul.f32 %v2400_v61, %v2398_v58  ;;  %v2385_v58 = vld [vmem:[#allocation12 + $0x20] sm:$0xff]  }
 0x8cf   : > { %v1236_v1 = vpack.c.bf16 %v1235_v62, %v1235_v62 }
 0x8d1   : > { %2167 = vmatmul.mubr.msk.bf16.vlgmr.msra.gmra.mrb[24].mxu1 %vm858_vm1, %v1236_v1 }
 0x8d2   : > { %2177 = vmatpush3.bf16.xpose.msra.mxu1 %v1341_v2  ;;  %2178 = vmatprep.mubr.msk.bf16.mxu1 %vm2649_vm0, %v2648_v0 }
 0x8d3   : > { %2188 = vmatprep.subr.bf16.mxu1 %v2648_v0 }
 0x8d9   : > { %2179 = vmatmul.mubr.msk.bf16.vlgmr.msra.gmra.mrb[28].mxu1 %vm858_vm1, %v1334_v34 }
 0x8da   : > { %2190 = vmatprep.mubr.msk.bf16.mxu1 %vm2649_vm0, %v2648_v0  ;;  %2189 = vmatpush3.bf16.msra.mxu1 %v1448_v24 }
 0x8db   : > { %2214 = vmatprep.subr.bf16.mxu1 %v2648_v0 }
 0x9a4   : > { %v1279_v4 = vpop.f32.mrb[24].mxu1 }
 0x9a5   : > { %v1285_v5 = vpack.c.bf16 %v1279_v4, %v1279_v4  ;;  %v2168_v6 = vpop.f32.mrb[25].mxu1  ;;  %v1967_v4 = vld [vmem:[%s3179_s5] ss:$0 sm:$0xff] }
 0x9a6   : > { %v1282_v7 = vpop.f32.mrb[26].mxu1  ;;  %v1968_v6 = vld [vmem:[%s3180_s6] ss:$0 sm:$0xff] }
 0x9a7   : > { %v2169_v8 = vpop.f32.mrb[27].mxu1  ;;  %2173 = vmatmul.mubr.msk.bf16.vlgmr.msra.gmra.mrb[16].mxu0 %vm858_vm1, %v1285_v5 }
 0x9a8   : > { %2184 = vmatprep.mubr.msk.bf16.mxu0 %vm2649_vm0, %v2648_v0 }
 0x9ac   : > { %v1377_v9 = vpop.f32.mrb[28].mxu1 }
 0x9ad   : > { %v2180_v10 = vpop.f32.mrb[29].mxu1  ;;  %v1383_v13 = vsel %vm858_vm1, %v1377_v9, -inf }
 0x9ae   : > { %1384 = vmax.xlane.f32.xlu0 %v1383_v13  ;;  %v1380_v14 = vpop.f32.mrb[30].mxu1  ;;  %v2387_v10 = vld [vmem:[#allocation12 + $0x30] sm:$0xff]   ;;  %v2388_v13 = vld [vmem:[#allocation12 + $0x38] sm:$0xff]  }
 0x9af   : > { %v2181_v15 = vpop.f32.mrb[31].mxu1  ;;  %v1969_v14 = vld [vmem:[%s3182_s8] ss:$0 sm:$0xff] }
 0x9c4   : > { %1395 = vrot.lane.b32.xlu0 %v3023_v11, %s2652_s27  ;;  %s518_s27 = scalar_lea.vmem [#allocation13], %s1927_s29  ;;  %s2555_s29 = scalar_lea.vmem %s2554_s14, 256 }
 0x9c5   : > { %s1792_s20 = sshll.u32 %s518_s27, 4  ;;  %s3129_s20 = int_to_ptr.vmem [resolvable:$true] %s1792_s20 }
 0x9c6   : > { %s2549_s25 = scalar_lea.vmem %s3129_s20, 128  ;;  %p2556_p2 = scmp.lt.s32.totalorder %s3129_s20, %s2554_s14 }
 0x9c7   : > { %p2550_p8 = scmp.ne.s32.totalorder %s3129_s20, %s2549_s25  ;;  %p2557_p3 = scmp.lt.s32.totalorder %s2555_s29, %s2549_s25 }
 0x9c9   : > { %p2551_p11 = pnand %p2550_p8, %p3227_p10  ;;  %p2558_p5 = por %p2557_p3, %p2556_p2 }
 0x9cb   : > { %p2552_p0 = pneg %p2551_p11 }
 0x9cd   : > { %p2559_p6 = pnand %p2558_p5, %p2552_p0 }
 0xa3b   : > { %v1385_v16 = vpop.xlane.xlu0 %1384 }
 0xa3c   : > { %v1386_v17 = vsub.f32 %v1377_v9, %v1385_v16 }
 0xa3e   : > { %v1387_v18 = vmul.f32 1.442695, %v1386_v17 }
 0xa3f   : > { %v1396_v19 = vpop.permute.xlu0 %1395 }
 0xa40   : > { %2401 = vpow2.f32 %v1387_v18  ;;  %v1401_v20 = vsel %vm920_vm2, %v1396_v19, 0 }
 0xa41   : > { %2183 = vmatpush3.bf16.msra.mxu0 %v1401_v20 }
 0xa42   : > { %2194 = vmatprep.subr.bf16.mxu0 %v2648_v0 }
 0xa4a   : > { %v2402_v21 = vpop.eup %2401 }
 0xa4b   : > { %v1389_v22 = vsel %vm858_vm1, %v2402_v21, 0.0 }
 0xa4c   : > { %1390 = vadd.xlane.f32.xlu1 %v1389_v22  ;;  %v1978_v22 = vld [vmem:[%s3184_s10] ss:$0 sm:$0xff] }
 0xa7a   : > { %v1326_v11 = vpop.f32.mrb[16].mxu0 }
 0xa7b   : > { %v1332_v25 = vadd.f32 %v1326_v11, %v3053_v46  ;;  %v2174_v26 = vpop.f32.mrb[17].mxu0 }
 0xa7c   : > { %v1329_v27 = vpop.f32.mrb[18].mxu0 }
 0xa7d   : > { %v2175_v28 = vpop.f32.mrb[19].mxu0 }
 0xad9   : > { %v1391_v29 = vpop.xlane.xlu1 %1390 }
 0xada   : > { %2403 = vrcp.f32 %v1391_v29 }
 0xae4   : > { %v2404_v30 = vpop.eup %2403 }
 0xae5   : > { %v1393_v31 = vmul.f32 %v2404_v30, %v2402_v21 }
 0xae7   : > { %v1394_v32 = vpack.c.bf16 %v1393_v31, %v1393_v31 }
 0xae9   : > { %2185 = vmatmul.mubr.msk.bf16.vlgmr.msra.gmra.mrb[20].mxu0 %vm858_vm1, %v1394_v32 }
 0xaea   : > { %2210 = vmatprep.mubr.msk.bf16.mxu0 %vm2649_vm0, %v2648_v0  ;;  %2195 = vmatpush3.bf16.msra.mxu0 %v2373_v40 }
 0xaeb   : > { %2196 = vmatprep.subr.bf16.mxu0 %v2648_v0 }
 0xaee   : > { %2197 = vmatpush3.bf16.msra.mxu0 %v2374_v48 }
 0xaef   : > { %2198 = vmatprep.subr.bf16.mxu0 %v2648_v0 }
 0xaf2   : > { %2199 = vmatpush3.bf16.msra.mxu0 %v2375_v49 }
 0xaf3   : > { %2200 = vmatprep.subr.bf16.mxu0 %v2648_v0 }
 0xaf6   : > { %2201 = vmatpush3.bf16.msra.mxu0 %v2376_v50 }
 0xaf7   : > { %2202 = vmatprep.subr.bf16.mxu0 %v2648_v0 }
 0xafa   : > { %2203 = vmatpush3.bf16.msra.mxu0 %v2377_v51 }
 0xafb   : > { %2204 = vmatprep.subr.bf16.mxu0 %v2648_v0 }
 0xafe   : > { %2205 = vmatpush3.bf16.msra.mxu0 %v2378_v52 }
 0xaff   : > { %2206 = vmatprep.subr.bf16.mxu0 %v2648_v0 }
 0xbbc   : > { %v1437_v33 = vpop.f32.mrb[20].mxu0 }
 0xbbd   : > { %v1443_v35 = vpack.c.bf16 %v1437_v33, %v1437_v33  ;;  %v2186_v36 = vpop.f32.mrb[21].mxu0 }
 0xbbe   : > { %v1440_v37 = vpop.f32.mrb[22].mxu0 }
 0xbbf   : > { %v2187_v38 = vpop.f32.mrb[23].mxu0  ;;  %2191 = vmatmul.mubr.msk.bf16.vlgmr.msra.gmra.mrb[32].mxu1 %vm858_vm1, %v1443_v35 }
 0xbc0   : > { %2230 = vmatprep.mubr.msk.bf16.mxu1 %vm2649_vm0, %v2648_v0  ;;  %2215 = vmatpush3.bf16.msra.mxu1 %v2381_v54  ;;  %v1987_v38 = vld [vmem:[%s3224_s30] ss:$0 sm:$0xff] }
 0xbc1   : > { %2216 = vmatprep.subr.bf16.mxu1 %v2648_v0 }
 0xbc4   : > { %2217 = vmatpush3.bf16.msra.mxu1 %v2382_v55 }
 0xbc5   : > { %2218 = vmatprep.subr.bf16.mxu1 %v2648_v0 }
 0xbc8   : > { %2219 = vmatpush3.bf16.msra.mxu1 %v2383_v56 }
 0xbc9   : > { %2220 = vmatprep.subr.bf16.mxu1 %v2648_v0 }
 0xbcc   : > { %2221 = vmatpush3.bf16.msra.mxu1 %v2384_v57 }
 0xbcd   : > { %2222 = vmatprep.subr.bf16.mxu1 %v2648_v0 }
 0xbd0   : > { %2223 = vmatpush3.bf16.msra.mxu1 %v2385_v58 }
 0xbd1   : > { %2224 = vmatprep.subr.bf16.mxu1 %v2648_v0 }
 0xbd4   : > { %2225 = vmatpush3.bf16.msra.mxu1 %v2386_v59 }
 0xbd5   : > { %2226 = vmatprep.subr.bf16.mxu1 %v2648_v0 }
 0xbd8   : > { %2227 = vmatpush3.bf16.msra.mxu1 %v2387_v10 }
 0xbd9   : > { %2228 = vmatprep.subr.bf16.mxu1 %v2648_v0 }
 0xbdc   : > { %2229 = vmatpush3.bf16.msra.mxu1 %v2388_v13 }
 0xc92   : > { %v1484_v41 = vpop.f32.mrb[32].mxu1 }
 0xc93   : > { %v1490_v42 = vadd.f32 %v1484_v41, %v1332_v25  ;;  %v2192_v43 = vpop.f32.mrb[33].mxu1  ;;  %v1988_v41 = vld [vmem:[%s3225_s19] ss:$0 sm:$0xff] }
 0xc94   : > { %v1487_v44 = vpop.f32.mrb[34].mxu1 }
 0xc95   : > { %v1491_v45 = vadd.f32 %v1490_v42, %v2945_v12  ;;  %v2193_v46 = vpop.f32.mrb[35].mxu1  ;;  %v2379_v12 = vld [vmem:[#allocation10 + $0x30] sm:$0xff]  }
 0xc96   : > { %2207 = vmatpush3.bf16.msra.mxu0 %v2379_v12 }
 0xc97   : > { %1494 = vadd.xlane.f32.xlu0 %v1491_v45  ;;  %v1497_v47 = vmul.f32 %v1491_v45, %v1491_v45  ;;  %2208 = vmatprep.subr.bf16.mxu0 %v2648_v0 }
 0xc99   : > { %1498 = vadd.xlane.f32.xlu1 %v1497_v47 }
 0xc9a   : > { %2209 = vmatpush3.bf16.msra.mxu0 %v2380_v53 }
 0xd24   : > { %v1495_v60 = vpop.xlane.xlu0 %1494 }
 0xd25   : > { %v1496_v61 = vmul.f32 0.03125, %v1495_v60 }
 0xd26   : > { %v1499_v62 = vpop.xlane.xlu1 %1498 }
 0xd27   : > { %v1501_v63 = vmul.f32 %v1496_v61, %v1496_v61  ;;  %v1500_v1 = vmul.f32 0.03125, %v1499_v62  ;;  %v1503_v39 = vsub.f32 %v1491_v45, %v1496_v61 }
 0xd29   : > { %v1502_v2 = vsub.f32 %v1500_v1, %v1501_v63 }
 0xd2b   : > { %v1504_v34 = vadd.f32 1e-06, %v1502_v2 }
 0xd2d   : > { %2405 = vrsqrt.f32 %v1504_v34 }
 0xd37   : > { %v2406_v3 = vpop.eup %2405 }
 0xd38   : > { %v1506_v5 = vmul.f32 %v2406_v3, %v1503_v39 }
 0xd3a   : > { %v1513_v7 = vmul.f32 %v1967_v4, %v1506_v5 }
 0xd3c   : > { %v1520_v8 = vadd.f32 %v1968_v6, %v1513_v7 }
 0xd3e   : > { %v1521_v9 = vpack.c.bf16 %v1520_v8, %v1520_v8 }
 0xd40   : > { %2211 = vmatmul.mubr.bf16.vlgmr.msra.gmra.mrb[24].mxu0 %v1521_v9 }
 0xe13   : > { %v1627_v15 = vpop.f32.mrb[24].mxu0 }
 0xe14   : > { %v1628_v16 = vadd.f32 %v1969_v14, %v1627_v15  ;;  %v2212_v17 = vpop.f32.mrb[25].mxu0 }
 0xe15   : > { %v1630_v18 = vpop.f32.mrb[26].mxu0 }
 0xe16   : > { %v1633_v19 = vmax.f32 %v1628_v16, 0.0  ;;  %v2213_v20 = vpop.f32.mrb[27].mxu0 }
 0xe18   : > { %v1634_v21 = vpack.c.bf16 %v1633_v19, %v1633_v19 }
 0xe1a   : > { %2231 = vmatmul.mubr.bf16.vlgmr.msra.gmra.mrb[36].mxu1 %v1634_v21 }
 0xeed   : > { %v1740_v23 = vpop.f32.mrb[36].mxu1 }
 0xeee   : > { %v1741_v0 = vadd.f32 %v1978_v22, %v1740_v23  ;;  %v2232_v24 = vpop.f32.mrb[37].mxu1 }
 0xeef   : > { %v1743_v11 = vpop.f32.mrb[38].mxu1 }
 0xef0   : > { %v1746_v25 = vadd.f32 %v1741_v0, %v1520_v8  ;;  %v2233_v26 = vpop.f32.mrb[39].mxu1 }
 0xef2   : > { %1749 = vadd.xlane.f32.xlu1 %v1746_v25  ;;  %v1752_v27 = vmul.f32 %v1746_v25, %v1746_v25 }
 0xef6   : > { %1753 = vadd.xlane.f32.xlu1 %v1752_v27 }
 0xf7f   : > { %v1750_v28 = vpop.xlane.xlu1 %1749 }
 0xf80   : > { %v1751_v29 = vmul.f32 0.03125, %v1750_v28 }
 0xf82   : > { %v1756_v31 = vmul.f32 %v1751_v29, %v1751_v29  ;;  %v1758_v36 = vsub.f32 %v1746_v25, %v1751_v29 }
 0xf83   : > { %v1754_v30 = vpop.xlane.xlu1 %1753 }
 0xf84   : > { %v1755_v32 = vmul.f32 0.03125, %v1754_v30 }
 0xf86   : > { %v1757_v33 = vsub.f32 %v1755_v32, %v1756_v31 }
 0xf88   : > { %v1759_v35 = vadd.f32 1e-06, %v1757_v33 }
 0xf8a   : > { %2407 = vrsqrt.f32 %v1759_v35 }
 0xf94   : > { %v2408_v37 = vpop.eup %2407 }
 0xf95   : > { %v1761_v40 = vmul.f32 %v2408_v37, %v1758_v36 }
 0xf97   : > { %v1768_v42 = vmul.f32 %v1987_v38, %v1761_v40 }
 0xf99   : > { %v1775_v43 = vadd.f32 %v1988_v41, %v1768_v42 }
 0xf9b   : > { %1776 = vst [vmem:[%s518_s27] sm:$0xff] %v1775_v43 }
 0xf9c   : > { %2562 = shalt.err (!%p2559_p6)
}
 0xf9d   : > { %s2563_s17 = scalar_lea.hbm %s3127_s12, 128  ;;  %s2567_s30 = scalar_lea.hbm %s3226_s18, 256 }
 0xf9e   : > { %p2564_p7 = scmp.ne.s32.totalorder %s3127_s12, %s2563_s17  ;;  %p2568_p4 = scmp.lt.u32.totalorder %s3127_s12, %s3226_s18 }
 0xf9f   : > { %p2569_p1 = scmp.lt.u32.totalorder %s2567_s30, %s2563_s17  ;;  %p2571_p8 = scmp.lt.u32.totalorder %s2563_s17, %s3127_s12 }
 0xfa0   : > { %p2565_p9 = pnand %p2564_p7, %p3227_p10 }
 0xfa1   : > { %p2570_p13 = por %p2569_p1, %p2568_p4 }
 0xfa2   : > { %p2566_p12 = pneg %p2565_p9 }
 0xfa3   : > { %p2572_p11 = por %p2571_p8, %p2570_p13 }
 0xfa5   : > { %p2573_p0 = pnand %p2572_p11, %p2566_p12 }
 0xfa7   : > { %2576 = shalt.err (!%p2573_p0)
}
 0xfa8   : > { %2254 = dma.vmem_to_hbm [thread:$0]  (%p3227_p10), %s3129_s20, 128, %s3127_s12, %s1778_s13  }
 0xfa9 PF: > { %s3228_s19 = sld [smem:[#allocation21_spill]]  ;;  %s3229_s24 = sld [smem:[#allocation18_spill]] }
 0xfaa   : > { %s3230_s27 = sld [smem:[#allocation24_spill]] }
 0xfaf   : > { %p2286_p2 = scmp.ge.s32.totalorder %s3228_s19, 2  ;;  %s1804_s16 = sand.u32 1, %s3229_s24  }
 0xfb0   : > { %p3231_p3 = scmp.ne.s32.totalorder %s3230_s27, 0  ;;  %s1805_s3 = scalar_lea.sflag [#allocation6], %s1804_s16 }
 0xfb2   : > { %p2273_p5 = pnand %p2286_p2, %p3231_p3 }
 0xfb4   : > { %2614 = dma.done.wait (!%p2273_p5), %s1805_s3, 128  }
 0xfb5   : > { %2616 = vsyncadd (!%p2273_p5), %s1805_s3, 4294967168  ;;  %s29_s30 = sadd.s32 1, %s3228_s19   ;;  %s3232_s28 = sld [smem:[#allocation19_spill]] }
 0xfb6   : > { %p26_p6 = scmp.ge.s32.totalorder %s29_s30, 4   ;;  %s3233_s27 = sld [smem:[#allocation25_spill]] }
 0xfb7   : > { %s3234_s15 = sld [smem:[#allocation20_spill]]  ;;  %s3235_s29 = sld [smem:[#allocation22_spill]] }
 0xfb8   : > { %s3236_s25 = smov %s2623_s26  ;;  %28 = sbr.rel (!%p26_p6) target bundleno = 12 (0xc), region = 133 }
 0xfbb   : > { %s3237_s26 = smov %s3232_s28 }
 0xfbd   : > { %s3238_s28 = smov %s3234_s15 }
 0xfbf   :  { %1810 = vsyncpa [#allocation5], 1 }
 0xfc0   :  { %1812 = vsyncpa [#allocation5 + $0x1], 1 }
 0xfc1   :  { %1813 = vsyncpa [#allocation8], 1 }
 0xfc2   :  { %1814 = vsyncpa [#allocation11], 1 }
 0xfc3   :  { %1815 = vsyncpa [#allocation6], 1 }
 0xfc4   :  { %1817 = vsyncpa [#allocation6 + $0x1], 1 }

</bundles_post_ra>
